<compile_context>
chip_gen: v7x
topology: tpu7x:2x2x1
jax: 0.10.0
libtpu: 0.0.40
codegen_flags: <defaults>
</compile_context>

<pallas_src>
import jax
import jax.numpy as jnp
from jax.experimental import pallas as pl
from jax.experimental.pallas import tpu as pltpu


def _round_up(x, m):
    return (x + m - 1) // m * m


def _encoder_kernel(x_ref, w1_ref, b1_ref, w2_ref, b2_ref, o_ref):
    # Layer 1: x(bf16) @ W1(bf16) -> f32 accumulator; bias + ReLU in f32.
    h = jnp.dot(x_ref[...], w1_ref[...], preferred_element_type=jnp.float32)
    h = jnp.maximum(h + b1_ref[...], 0.0)

    # Layer 2: downcast the activation to bf16 only right before the MXU.
    o = jnp.dot(h.astype(jnp.bfloat16), w2_ref[...],
                preferred_element_type=jnp.float32)
    o = jnp.maximum(o + b2_ref[...], 0.0)
    o_ref[...] = o.astype(o_ref.dtype)


def encoder_forward(x_nchw, w1, b1, w2, b2, *, tile_b=256):
    """Encoder forward pass.

    x_nchw: [B, C, H, W] with C*H*W == input_dim
    w1:     [input_dim, r_dim]   (transposed vs. PyTorch nn.Linear's [out, in])
    b1:     [r_dim]
    w2:     [r_dim, r_dim]
    b2:     [r_dim]
    returns [B, r_dim] float32
    """
    B = x_nchw.shape[0]
    K, N = w1.shape                      # input_dim, r_dim
    assert w2.shape == (N, N)

    K_pad = _round_up(K, 128)            # 784 -> 896
    N_pad = _round_up(N, 128)            # 400 -> 512

    # nn.Flatten(): row-major flatten of non-batch dims (glue, not hot path).
    x = x_nchw.reshape(B, -1).astype(jnp.float32)
    assert x.shape[1] == K

    if B <= tile_b:
        B_pad = _round_up(B, 8)
        grid_b = None                    # single-shot, no grid
    else:
        B_pad = _round_up(B, tile_b)
        grid_b = B_pad // tile_b

    # Zero padding is exact: zero K-rows/N-cols contribute nothing through the
    # matmuls, padded output rows/cols are sliced off below.
    x_p = jnp.pad(x, ((0, B_pad - B), (0, K_pad - K))).astype(jnp.bfloat16)
    w1_p = jnp.pad(w1.astype(jnp.float32),
                   ((0, K_pad - K), (0, N_pad - N))).astype(jnp.bfloat16)
    w2_p = jnp.pad(w2.astype(jnp.float32),
                   ((0, N_pad - N), (0, N_pad - N))).astype(jnp.bfloat16)
    b1_p = jnp.pad(b1.astype(jnp.float32).reshape(1, N), ((0, 0), (0, N_pad - N)))
    b2_p = jnp.pad(b2.astype(jnp.float32).reshape(1, N), ((0, 0), (0, N_pad - N)))

    bytes_accessed = (x_p.size * 2 + w1_p.size * 2 + w2_p.size * 2
                      + b1_p.size * 4 + b2_p.size * 4 + B_pad * N_pad * 4)
    cost = pl.CostEstimate(
        flops=2 * B_pad * (K_pad * N_pad + N_pad * N_pad),
        transcendentals=0,
        bytes_accessed=bytes_accessed,
    )

    out_shape = jax.ShapeDtypeStruct((B_pad, N_pad), jnp.float32)

    if grid_b is None:
        # Everything fits comfortably in VMEM: whole-array operands, no grid.
        out = pl.pallas_call(
            _encoder_kernel,
            out_shape=out_shape,
            in_specs=[pl.BlockSpec(memory_space=pltpu.MemorySpace.VMEM)] * 5,
            out_specs=pl.BlockSpec(memory_space=pltpu.MemorySpace.VMEM),
            cost_estimate=cost,
        )(x_p, w1_p, b1_p, w2_p, b2_p)
    else:
        # Batch-tiled: weights/biases resident across batch tiles, x/out
        # tiles streamed (amortizes the dominating weight DMA over the batch).
        out = pl.pallas_call(
            _encoder_kernel,
            out_shape=out_shape,
            grid=(grid_b,),
            in_specs=[
                pl.BlockSpec((tile_b, K_pad), lambda i: (i, 0)),
                pl.BlockSpec((K_pad, N_pad), lambda i: (0, 0)),
                pl.BlockSpec((1, N_pad), lambda i: (0, 0)),
                pl.BlockSpec((N_pad, N_pad), lambda i: (0, 0)),
                pl.BlockSpec((1, N_pad), lambda i: (0, 0)),
            ],
            out_specs=pl.BlockSpec((tile_b, N_pad), lambda i: (i, 0)),
            compiler_params=pltpu.CompilerParams(
                dimension_semantics=("parallel",)),
            cost_estimate=cost,
        )(x_p, w1_p, b1_p, w2_p, b2_p)

    return out[:B, :N]


def _reference_forward(x_nchw, w1, b1, w2, b2):
    # Pure-JAX f32 reference matching the PyTorch module exactly.
    B = x_nchw.shape[0]
    x = x_nchw.reshape(B, -1).astype(jnp.float32)
    h = jnp.maximum(x @ w1 + b1, 0.0)
    return jnp.maximum(h @ w2 + b2, 0.0)


if __name__ == "__main__":
    # Module defaults: input_dim=784 (1x28x28), r_dim=400.
    B, C, H, W = 8, 1, 28, 28
    input_dim = C * H * W          # 784
    r_dim = 400

    key = jax.random.PRNGKey(0)
    kx, kxb, kw1, kb1, kw2, kb2 = jax.random.split(key, 6)

    x = jax.random.normal(kx, (B, C, H, W), dtype=jnp.float32)

    # Deterministic parameter init (Kaiming-uniform-ish scale, like nn.Linear).
    lim1 = 1.0 / float(jnp.sqrt(input_dim))
    lim2 = 1.0 / float(jnp.sqrt(r_dim))
    w1 = jax.random.uniform(kw1, (input_dim, r_dim), jnp.float32, -lim1, lim1)
    b1 = jax.random.uniform(kb1, (r_dim,), jnp.float32, -lim1, lim1)
    w2 = jax.random.uniform(kw2, (r_dim, r_dim), jnp.float32, -lim2, lim2)
    b2 = jax.random.uniform(kb2, (r_dim,), jnp.float32, -lim2, lim2)

    # Small batch -> single-shot (no-grid) path.  Tolerances are loosened vs.
    # the f32 reference because the weights/activations feed the MXU as bf16.
    out = jax.block_until_ready(encoder_forward(x, w1, b1, w2, b2))
    ref = _reference_forward(x, w1, b1, w2, b2)
    assert out.shape == (B, r_dim)
    assert jnp.allclose(out, ref, atol=3e-2, rtol=3e-2)

    # Larger ragged batch -> batch-tiled path (weights resident in VMEM).
    Bb = 520
    xb = jax.random.normal(kxb, (Bb, C, H, W), dtype=jnp.float32)
    outb = jax.block_until_ready(encoder_forward(xb, w1, b1, w2, b2))
    refb = _reference_forward(xb, w1, b1, w2, b2)
    assert outb.shape == (Bb, r_dim)
    assert jnp.allclose(outb, refb, atol=3e-2, rtol=3e-2)

    print("KERNEL_OK")
</pallas_src>

<mosaic_0001>
module attributes {stable_mosaic.version = 11 : i64} {
  func.func @_encoder_kernel(%arg0: memref<8x896xbf16, #tpu.memory_space<vmem>>, %arg1: memref<896x512xbf16, #tpu.memory_space<vmem>>, %arg2: memref<1x512xf32, #tpu.memory_space<vmem>>, %arg3: memref<512x512xbf16, #tpu.memory_space<vmem>>, %arg4: memref<1x512xf32, #tpu.memory_space<vmem>>, %arg5: memref<8x512xf32, #tpu.memory_space<vmem>>) attributes {dimension_semantics = [], scalar_prefetch = 0 : i64, scratch_operands = 0 : i64, tpu.core_type = #tpu.core_type<tc>} {
    %c0 = arith.constant 0 : index
    %c0_0 = arith.constant 0 : index
    %0 = vector.load %arg0[%c0, %c0_0] : memref<8x896xbf16, #tpu.memory_space<vmem>>, vector<8x896xbf16>
    %c0_1 = arith.constant 0 : index
    %c0_2 = arith.constant 0 : index
    %1 = vector.load %arg1[%c0_1, %c0_2] : memref<896x512xbf16, #tpu.memory_space<vmem>>, vector<896x512xbf16>
    %cst = arith.constant dense<0.000000e+00> : vector<8x512xf32>
    %2 = tpu.matmul %0, %1, %cst {dimension_numbers = #tpu.dot_dimension_numbers<[1], [0], [0], [1], [0, 0, 1, 1], [], []>} : vector<8x896xbf16>, vector<896x512xbf16>, vector<8x512xf32> -> vector<8x512xf32>
    %c0_3 = arith.constant 0 : index
    %c0_4 = arith.constant 0 : index
    %3 = vector.load %arg2[%c0_3, %c0_4] : memref<1x512xf32, #tpu.memory_space<vmem>>, vector<1x512xf32>
    %4 = vector.broadcast %3 : vector<1x512xf32> to vector<8x512xf32>
    %5 = arith.addf %2, %4 : vector<8x512xf32>
    %cst_5 = arith.constant 0.000000e+00 : f32
    %6 = vector.broadcast %cst_5 : f32 to vector<8x512xf32>
    %7 = arith.maximumf %5, %6 : vector<8x512xf32>
    %8 = arith.truncf %7 : vector<8x512xf32> to vector<8x512xbf16>
    %c0_6 = arith.constant 0 : index
    %c0_7 = arith.constant 0 : index
    %9 = vector.load %arg3[%c0_6, %c0_7] : memref<512x512xbf16, #tpu.memory_space<vmem>>, vector<512x512xbf16>
    %cst_8 = arith.constant dense<0.000000e+00> : vector<8x512xf32>
    %10 = tpu.matmul %8, %9, %cst_8 {dimension_numbers = #tpu.dot_dimension_numbers<[1], [0], [0], [1], [0, 0, 1, 1], [], []>} : vector<8x512xbf16>, vector<512x512xbf16>, vector<8x512xf32> -> vector<8x512xf32>
    %c0_9 = arith.constant 0 : index
    %c0_10 = arith.constant 0 : index
    %11 = vector.load %arg4[%c0_9, %c0_10] : memref<1x512xf32, #tpu.memory_space<vmem>>, vector<1x512xf32>
    %12 = vector.broadcast %11 : vector<1x512xf32> to vector<8x512xf32>
    %13 = arith.addf %10, %12 : vector<8x512xf32>
    %cst_11 = arith.constant 0.000000e+00 : f32
    %14 = vector.broadcast %cst_11 : f32 to vector<8x512xf32>
    %15 = arith.maximumf %13, %14 : vector<8x512xf32>
    %c0_12 = arith.constant 0 : index
    %c0_13 = arith.constant 0 : index
    %16 = vector.load %arg5[%c0_12, %c0_13] : memref<8x512xf32, #tpu.memory_space<vmem>>, vector<8x512xf32>
    tpu.vector_store %arg5[%c0_12, %c0_13], %15 {strides = array<i32>} : memref<8x512xf32, #tpu.memory_space<vmem>>, vector<8x512xf32>,
    return
  }
}

</mosaic_0001>

<bundles_post_ra>
// kernel: tpu_custom_call.1
= control target key start
LH: loop header
LB: loop body
LE: loop exit
PB: predicated region body
PF: predicated region fallthrough
CT: control target
= control target key end

     0   :  { %10 = vsyncpa [#allocation3], 0  ;;  %s3941_s0 = inlined_call_operand.hbm [shape: bf16[8,896], index: 0, kind: input, shape index: {}]   ;;  %s3942_s1 = inlined_call_operand.hbm [shape: bf16[896,512], index: 1, kind: input, shape index: {}]   ;;  %s3943_s2 = inlined_call_operand.vmem [shape: f32[1,512], index: 2, kind: input, shape index: {}]   ;;  %s3944_s3 = inlined_call_operand.hbm [shape: bf16[512,512], index: 3, kind: input, shape index: {}]   ;;  %s3945_s4 = inlined_call_operand.vmem [shape: f32[1,512], index: 4, kind: input, shape index: {}]   ;;  %s3946_s5 = inlined_call_operand.hbm [shape: f32[8,512], index: 5, kind: output, shape index: {}]  }
   0x1   :  { %11 = vsyncpa [#allocation6], 0 }
   0x2   :  { %12 = vsyncpa [#allocation4], 0  ;;  %s3805_s18 = smov [#allocation5]   ;;  %s3711_s22 = scalar_lea.hbm %s3942_s1, 28672 }
   0x3   :  { %s28_s19 = sshll.u32 %s3805_s18, 4  ;;  %p3712_p0 = scmp.ne.s32.totalorder %s3942_s1, %s3711_s22  ;;  %s29_s19 = int_to_ptr.vmem [resolvable:$true] %s28_s19 }
   0x4   :  { %p3715_p1 = scmp.lt.u32.totalorder %s3711_s22, %s3942_s1 }
   0x6   :  { %p3717_p2 = pnand %p3715_p1, %p3712_p0 }
   0x8   :  { %3720 = shalt.err (!%p3717_p2)
}
   0x9   :  { %s3721_s27 = scalar_lea.vmem %s29_s19, 28672  ;;  %p3726_p4 = scmp.lt.s32.totalorder %s29_s19, %s29_s19 }
   0xa   :  { %p3722_p3 = scmp.ne.s32.totalorder %s29_s19, %s3721_s27  ;;  %p3727_p5 = scmp.lt.s32.totalorder %s3721_s27, %s3721_s27 }
   0xc   :  { %p3728_p6 = por %p3727_p5, %p3726_p4 }
   0xe   :  { %p3729_p7 = pnand %p3728_p6, %p3722_p3 }
  0x10   :  { %3732 = shalt.err (!%p3729_p7)
}
  0x11   :  { %s3806_s28 = smov 256   ;;  %s3807_s29 = smov 16  }
  0x12   :  { %34 = dma.hbm_to_vmem [thread:$0]  %s3942_s1, 28672, %s29_s19, [#allocation6], %s3806_s28, %s3806_s28, %s3807_s29  }
  0x13   :  { %s3808_s7 = smov [#allocation2]   ;;  %s3809_s9 = smov [#allocation7]  }
  0x14   :  { %s19_s8 = sshll.u32 %s3808_s7, 4  ;;  %s42_s10 = sshll.u32 %s3809_s9, 4  ;;  %s20_s8 = int_to_ptr.vmem [resolvable:$true] %s19_s8  ;;  %s43_s10 = int_to_ptr.vmem [resolvable:$true] %s42_s10 }
  0x15   :  { %s3733_s13 = scalar_lea.hbm %s3941_s0, 448 }
  0x16   :  { %p3734_p8 = scmp.ne.s32.totalorder %s3941_s0, %s3733_s13  ;;  %p3737_p9 = scmp.lt.u32.totalorder %s3733_s13, %s3941_s0 }
  0x18   :  { %p3739_p10 = pnand %p3737_p9, %p3734_p8 }
  0x1a   :  { %3742 = shalt.err (!%p3739_p10)
}
  0x1b   :  { %s3743_s1 = scalar_lea.vmem %s20_s8, 448  ;;  %p3748_p12 = scmp.lt.s32.totalorder %s20_s8, %s20_s8 }
  0x1c   :  { %p3744_p11 = scmp.ne.s32.totalorder %s20_s8, %s3743_s1  ;;  %p3749_p13 = scmp.lt.s32.totalorder %s3743_s1, %s3743_s1 }
  0x1e   :  { %p3750_p0 = por %p3749_p13, %p3748_p12 }
  0x20   :  { %p3751_p1 = pnand %p3750_p0, %p3744_p11 }
  0x22   :  { %3754 = shalt.err (!%p3751_p1)
}
  0x23   :  { %22 = dma.hbm_to_vmem [thread:$0]  %s3941_s0, 448, %s20_s8, [#allocation3]  }
  0x24   :  { %s3755_s22 = scalar_lea.hbm %s3944_s3, 16384 }
  0x25   :  { %p3756_p2 = scmp.ne.s32.totalorder %s3944_s3, %s3755_s22  ;;  %p3759_p3 = scmp.lt.u32.totalorder %s3755_s22, %s3944_s3 }
  0x27   :  { %p3761_p4 = pnand %p3759_p3, %p3756_p2 }
  0x29   :  { %3764 = shalt.err (!%p3761_p4)
}
  0x2a   :  { %s3765_s27 = scalar_lea.vmem %s43_s10, 16384  ;;  %p3770_p6 = scmp.lt.s32.totalorder %s43_s10, %s43_s10 }
  0x2b   :  { %p3766_p5 = scmp.ne.s32.totalorder %s43_s10, %s3765_s27  ;;  %p3771_p7 = scmp.lt.s32.totalorder %s3765_s27, %s3765_s27 }
  0x2d   :  { %p3772_p8 = por %p3771_p7, %p3770_p6 }
  0x2f   :  { %p3773_p9 = pnand %p3772_p8, %p3766_p5 }
  0x31   :  { %3776 = shalt.err (!%p3773_p9)
}
  0x32   :  { %48 = dma.hbm_to_vmem [thread:$0]  %s3944_s3, 16384, %s43_s10, [#allocation6], %s3806_s28, %s3806_s28, %s3807_s29  }
  0x33   :  { %3799 = dma.done.wait [#allocation3], 448  }
  0x34   :  { %3800 = vsyncadd [#allocation3], 4294966848 }
  0x35   :  { %3801 = dma.done.wait [#allocation6], 45056  }
  0x36   :  { %3802 = vsyncadd [#allocation6], 4294922240  ;;  %v3176_v0 = vld [vmem:[#allocation5 + $0x4] ss:$16 sps:$4 sm:$0xff]   ;;  %v3178_v1 = vld [vmem:[#allocation5 + $0xc] ss:$16 sps:$4 sm:$0xff]  }
  0x37   :  { %1456 = vmatprep.subr.bf16.mxu0 %v3176_v0  ;;  %v3180_v2 = vld [vmem:[#allocation5] ss:$16 sps:$4 sm:$0xff]   ;;  %v3181_v3 = vld [vmem:[#allocation5 + $0x8] ss:$16 sps:$4 sm:$0xff]   ;;  %1620 = vmatprep.subr.bf16.mxu1 %v3178_v1  ;;  %v3182_v4 = vld [vmem:[#allocation5 + $0x24] ss:$16 sps:$4 sm:$0xff]  }
  0x38   :  { %1457 = vmatpush1.bf16.msra.mxu0 %v3180_v2  ;;  %1621 = vmatpush1.bf16.msra.mxu1 %v3181_v3  ;;  %v3184_v5 = vld [vmem:[#allocation5 + $0x2c] ss:$16 sps:$4 sm:$0xff]   ;;  %v3186_v6 = vld [vmem:[#allocation5 + $0x20] ss:$16 sps:$4 sm:$0xff]   ;;  %v3187_v7 = vld [vmem:[#allocation5 + $0x28] ss:$16 sps:$4 sm:$0xff]  }
  0x39   :  { %1458 = vmatprep.subr.bf16.mxu0 %v3182_v4  ;;  %1622 = vmatprep.subr.bf16.mxu1 %v3184_v5  ;;  %v3188_v8 = vld [vmem:[#allocation5 + $0x44] ss:$16 sps:$4 sm:$0xff]   ;;  %v3190_v9 = vld [vmem:[#allocation5 + $0x4c] ss:$16 sps:$4 sm:$0xff]   ;;  %v3192_v10 = vld [vmem:[#allocation5 + $0x40] ss:$16 sps:$4 sm:$0xff]  }
  0x3a   :  { %v3193_v11 = vld [vmem:[#allocation5 + $0x48] ss:$16 sps:$4 sm:$0xff]   ;;  %v3194_v12 = vld [vmem:[#allocation5 + $0x64] ss:$16 sps:$4 sm:$0xff]   ;;  %v3196_v13 = vld [vmem:[#allocation5 + $0x6c] ss:$16 sps:$4 sm:$0xff]  }
  0x3b   :  { %v3198_v14 = vld [vmem:[#allocation5 + $0x60] ss:$16 sps:$4 sm:$0xff]   ;;  %v3199_v15 = vld [vmem:[#allocation5 + $0x68] ss:$16 sps:$4 sm:$0xff]   ;;  %v3200_v16 = vld [vmem:[#allocation5 + $0x84] ss:$16 sps:$4 sm:$0xff]  }
  0x3c   :  { %1459 = vmatpush1.bf16.msra.mxu0 %v3186_v6  ;;  %1623 = vmatpush1.bf16.msra.mxu1 %v3187_v7  ;;  %v3202_v17 = vld [vmem:[#allocation5 + $0x8c] ss:$16 sps:$4 sm:$0xff]   ;;  %v3204_v18 = vld [vmem:[#allocation5 + $0x80] ss:$16 sps:$4 sm:$0xff]   ;;  %v3205_v19 = vld [vmem:[#allocation5 + $0x88] ss:$16 sps:$4 sm:$0xff]  }
  0x3d   :  { %1460 = vmatprep.subr.bf16.mxu0 %v3188_v8  ;;  %1624 = vmatprep.subr.bf16.mxu1 %v3190_v9  ;;  %v3206_v20 = vld [vmem:[#allocation5 + $0xa4] ss:$16 sps:$4 sm:$0xff]   ;;  %v3208_v21 = vld [vmem:[#allocation5 + $0xac] ss:$16 sps:$4 sm:$0xff]   ;;  %v3210_v22 = vld [vmem:[#allocation5 + $0xa0] ss:$16 sps:$4 sm:$0xff]  }
  0x3e   :  { %v3211_v23 = vld [vmem:[#allocation5 + $0xa8] ss:$16 sps:$4 sm:$0xff]   ;;  %v3212_v24 = vld [vmem:[#allocation5 + $0xc4] ss:$16 sps:$4 sm:$0xff]   ;;  %v3214_v25 = vld [vmem:[#allocation5 + $0xcc] ss:$16 sps:$4 sm:$0xff]  }
  0x3f   :  { %v3216_v26 = vld [vmem:[#allocation5 + $0xc0] ss:$16 sps:$4 sm:$0xff]   ;;  %v3217_v27 = vld [vmem:[#allocation5 + $0xc8] ss:$16 sps:$4 sm:$0xff]   ;;  %v3218_v28 = vld [vmem:[#allocation5 + $0xe4] ss:$16 sps:$4 sm:$0xff]  }
  0x40   :  { %1461 = vmatpush1.bf16.msra.mxu0 %v3192_v10  ;;  %1625 = vmatpush1.bf16.msra.mxu1 %v3193_v11  ;;  %v3220_v29 = vld [vmem:[#allocation5 + $0xec] ss:$16 sps:$4 sm:$0xff]   ;;  %v3222_v30 = vld [vmem:[#allocation5 + $0xe0] ss:$16 sps:$4 sm:$0xff]   ;;  %v3223_v31 = vld [vmem:[#allocation5 + $0xe8] ss:$16 sps:$4 sm:$0xff]  }
  0x41   :  { %1462 = vmatprep.subr.bf16.mxu0 %v3194_v12  ;;  %1626 = vmatprep.subr.bf16.mxu1 %v3196_v13  ;;  %v3224_v32 = vld [vmem:[#allocation5 + $0x104] ss:$16 sps:$4 sm:$0xff]   ;;  %v3226_v33 = vld [vmem:[#allocation5 + $0x10c] ss:$16 sps:$4 sm:$0xff]   ;;  %v3228_v34 = vld [vmem:[#allocation5 + $0x100] ss:$16 sps:$4 sm:$0xff]  }
  0x42   :  { %v3229_v35 = vld [vmem:[#allocation5 + $0x108] ss:$16 sps:$4 sm:$0xff]   ;;  %v3230_v36 = vld [vmem:[#allocation5 + $0x124] ss:$16 sps:$4 sm:$0xff]   ;;  %v3232_v37 = vld [vmem:[#allocation5 + $0x12c] ss:$16 sps:$4 sm:$0xff]  }
  0x43   :  { %v3234_v38 = vld [vmem:[#allocation5 + $0x120] ss:$16 sps:$4 sm:$0xff]   ;;  %v3235_v39 = vld [vmem:[#allocation5 + $0x128] ss:$16 sps:$4 sm:$0xff]   ;;  %v3236_v40 = vld [vmem:[#allocation5 + $0x144] ss:$16 sps:$4 sm:$0xff]  }
  0x44   :  { %1463 = vmatpush1.bf16.msra.mxu0 %v3198_v14  ;;  %1627 = vmatpush1.bf16.msra.mxu1 %v3199_v15  ;;  %v3238_v41 = vld [vmem:[#allocation5 + $0x14c] ss:$16 sps:$4 sm:$0xff]   ;;  %v3240_v42 = vld [vmem:[#allocation5 + $0x140] ss:$16 sps:$4 sm:$0xff]   ;;  %v3241_v43 = vld [vmem:[#allocation5 + $0x148] ss:$16 sps:$4 sm:$0xff]  }
  0x45   :  { %1464 = vmatprep.subr.bf16.mxu0 %v3200_v16  ;;  %1628 = vmatprep.subr.bf16.mxu1 %v3202_v17  ;;  %v3242_v44 = vld [vmem:[#allocation5 + $0x164] ss:$16 sps:$4 sm:$0xff]   ;;  %v3244_v45 = vld [vmem:[#allocation5 + $0x16c] ss:$16 sps:$4 sm:$0xff]   ;;  %v3246_v47 = vld [vmem:[#allocation5 + $0x160] ss:$16 sps:$4 sm:$0xff]  }
  0x46   :  { %v61_v46 = vld [vmem:[#allocation2] sm:$0xff]  ;;  %v3250_v51 = vld [vmem:[#allocation5 + $0x18c] ss:$16 sps:$4 sm:$0xff]   ;;  %v3252_v52 = vld [vmem:[#allocation5 + $0x180] ss:$16 sps:$4 sm:$0xff]   ;;  %s3811_s6 = smov [#allocation8]  }
  0x47   :  { %v2771_v48 = vcombine.high %v61_v46, %v61_v46  ;;  %v3247_v49 = vld [vmem:[#allocation5 + $0x168] ss:$16 sps:$4 sm:$0xff]   ;;  %v3248_v50 = vld [vmem:[#allocation5 + $0x184] ss:$16 sps:$4 sm:$0xff]   ;;  %v3256_v55 = vld [vmem:[#allocation5 + $0x1ac] ss:$16 sps:$4 sm:$0xff]   ;;  %v2770_v4 = vcombine.low %v61_v46, %v61_v46 }
  0x48   :  { %1465 = vmatpush1.bf16.msra.mxu0 %v3204_v18  ;;  %1629 = vmatpush1.bf16.msra.mxu1 %v3205_v19  ;;  %v3253_v53 = vld [vmem:[#allocation5 + $0x188] ss:$16 sps:$4 sm:$0xff]   ;;  %v3254_v54 = vld [vmem:[#allocation5 + $0x1a4] ss:$16 sps:$4 sm:$0xff]   ;;  %v3258_v56 = vld [vmem:[#allocation5 + $0x1a0] ss:$16 sps:$4 sm:$0xff]  }
  0x49   :  { %1466 = vmatprep.subr.bf16.mxu0 %v3206_v20  ;;  %1630 = vmatprep.subr.bf16.mxu1 %v3208_v21  ;;  %v3259_v57 = vld [vmem:[#allocation5 + $0x1a8] ss:$16 sps:$4 sm:$0xff]   ;;  %v3260_v58 = vld [vmem:[#allocation5 + $0x1c4] ss:$16 sps:$4 sm:$0xff]   ;;  %v3262_v59 = vld [vmem:[#allocation5 + $0x1cc] ss:$16 sps:$4 sm:$0xff]  }
  0x4a   :  { %1488 = vmatprep.mubr.bf16.mxu0 %v2771_v48  ;;  %1652 = vmatprep.mubr.bf16.mxu1 %v2771_v48  ;;  %v3264_v60 = vld [vmem:[#allocation5 + $0x1c0] ss:$16 sps:$4 sm:$0xff]   ;;  %v3265_v61 = vld [vmem:[#allocation5 + $0x1c8] ss:$16 sps:$4 sm:$0xff]   ;;  %v3266_v62 = vld [vmem:[#allocation5 + $0x1e4] ss:$16 sps:$4 sm:$0xff]  }
  0x4b   :  { %v3268_v63 = vld [vmem:[#allocation5 + $0x1ec] ss:$16 sps:$4 sm:$0xff]   ;;  %v3270_v0 = vld [vmem:[#allocation5 + $0x1e0] ss:$16 sps:$4 sm:$0xff]   ;;  %v3271_v1 = vld [vmem:[#allocation5 + $0x1e8] ss:$16 sps:$4 sm:$0xff]  }
  0x4c   :  { %1467 = vmatpush1.bf16.msra.mxu0 %v3210_v22  ;;  %1631 = vmatpush1.bf16.msra.mxu1 %v3211_v23  ;;  %v3276_v2 = vld [vmem:[#allocation5 + $0x204] ss:$16 sps:$4 sm:$0xff]   ;;  %v3279_v3 = vld [vmem:[#allocation5 + $0x20c] ss:$16 sps:$4 sm:$0xff]   ;;  %v3274_v5 = vld [vmem:[#allocation5 + $0x200] ss:$16 sps:$4 sm:$0xff]  }
  0x4d   :  { %1468 = vmatprep.subr.bf16.mxu0 %v3212_v24  ;;  %1632 = vmatprep.subr.bf16.mxu1 %v3214_v25  ;;  %v3277_v6 = vld [vmem:[#allocation5 + $0x208] ss:$16 sps:$4 sm:$0xff]   ;;  %v3282_v7 = vld [vmem:[#allocation5 + $0x224] ss:$16 sps:$4 sm:$0xff]   ;;  %v3285_v8 = vld [vmem:[#allocation5 + $0x22c] ss:$16 sps:$4 sm:$0xff]  }
  0x4e   :  { %v3280_v9 = vld [vmem:[#allocation5 + $0x220] ss:$16 sps:$4 sm:$0xff]   ;;  %v3283_v10 = vld [vmem:[#allocation5 + $0x228] ss:$16 sps:$4 sm:$0xff]   ;;  %v3288_v11 = vld [vmem:[#allocation5 + $0x244] ss:$16 sps:$4 sm:$0xff]  }
  0x4f   :  { %v3291_v12 = vld [vmem:[#allocation5 + $0x24c] ss:$16 sps:$4 sm:$0xff]   ;;  %v3286_v13 = vld [vmem:[#allocation5 + $0x240] ss:$16 sps:$4 sm:$0xff]   ;;  %v3289_v14 = vld [vmem:[#allocation5 + $0x248] ss:$16 sps:$4 sm:$0xff]  }
  0x50   :  { %1469 = vmatpush1.bf16.msra.mxu0 %v3216_v26  ;;  %1633 = vmatpush1.bf16.msra.mxu1 %v3217_v27  ;;  %v3294_v15 = vld [vmem:[#allocation5 + $0x264] ss:$16 sps:$4 sm:$0xff]   ;;  %v3297_v16 = vld [vmem:[#allocation5 + $0x26c] ss:$16 sps:$4 sm:$0xff]   ;;  %v3292_v17 = vld [vmem:[#allocation5 + $0x260] ss:$16 sps:$4 sm:$0xff]  }
  0x51   :  { %1470 = vmatprep.subr.bf16.mxu0 %v3218_v28  ;;  %1634 = vmatprep.subr.bf16.mxu1 %v3220_v29  ;;  %v3295_v18 = vld [vmem:[#allocation5 + $0x268] ss:$16 sps:$4 sm:$0xff]   ;;  %v3300_v19 = vld [vmem:[#allocation5 + $0x284] ss:$16 sps:$4 sm:$0xff]   ;;  %v3303_v20 = vld [vmem:[#allocation5 + $0x28c] ss:$16 sps:$4 sm:$0xff]  }
  0x52   :  { %v3298_v21 = vld [vmem:[#allocation5 + $0x280] ss:$16 sps:$4 sm:$0xff]   ;;  %v3301_v22 = vld [vmem:[#allocation5 + $0x288] ss:$16 sps:$4 sm:$0xff]   ;;  %v3306_v23 = vld [vmem:[#allocation5 + $0x2a4] ss:$16 sps:$4 sm:$0xff]  }
  0x53   :  { %v3309_v24 = vld [vmem:[#allocation5 + $0x2ac] ss:$16 sps:$4 sm:$0xff]   ;;  %v3304_v25 = vld [vmem:[#allocation5 + $0x2a0] ss:$16 sps:$4 sm:$0xff]   ;;  %v3307_v26 = vld [vmem:[#allocation5 + $0x2a8] ss:$16 sps:$4 sm:$0xff]  }
  0x54   :  { %1471 = vmatpush1.bf16.msra.mxu0 %v3222_v30  ;;  %1635 = vmatpush1.bf16.msra.mxu1 %v3223_v31  ;;  %v3312_v27 = vld [vmem:[#allocation5 + $0x2c4] ss:$16 sps:$4 sm:$0xff]   ;;  %v3315_v28 = vld [vmem:[#allocation5 + $0x2cc] ss:$16 sps:$4 sm:$0xff]   ;;  %v3310_v31 = vld [vmem:[#allocation5 + $0x2c0] ss:$16 sps:$4 sm:$0xff]  }
  0x55   :  { %1472 = vmatprep.subr.bf16.mxu0 %v3224_v32  ;;  %1636 = vmatprep.subr.bf16.mxu1 %v3226_v33  ;;  %v3884_v29 = vld [vmem:[#allocation2 + $0x8] sm:$0xff]  ;;  %v3313_v32 = vld [vmem:[#allocation5 + $0x2c8] ss:$16 sps:$4 sm:$0xff]   ;;  %v3318_v33 = vld [vmem:[#allocation5 + $0x2e4] ss:$16 sps:$4 sm:$0xff]   ;;  %s2760_s7 = sshll.u32 %s3811_s6, 4  ;;  %s2761_s7 = int_to_ptr.vmem [resolvable:$true] %s2760_s7 }
  0x56   :  { %v2773_v30 = vcombine.high %v3884_v29, %v3884_v29  ;;  %v3339_v46 = vld [vmem:[#allocation5 + $0x34c] ss:$16 sps:$4 sm:$0xff]   ;;  %v3337_v48 = vld [vmem:[#allocation5 + $0x348] ss:$16 sps:$4 sm:$0xff]   ;;  %p3782_p11 = scmp.lt.s32.totalorder %s2761_s7, %s2761_s7 }
  0x58   :  { %1473 = vmatpush1.bf16.msra.mxu0 %v3228_v34  ;;  %1637 = vmatpush1.bf16.msra.mxu1 %v3229_v35  ;;  %v3321_v34 = vld [vmem:[#allocation5 + $0x2ec] ss:$16 sps:$4 sm:$0xff]   ;;  %v3316_v35 = vld [vmem:[#allocation5 + $0x2e0] ss:$16 sps:$4 sm:$0xff]  }
  0x59   :  { %1474 = vmatprep.subr.bf16.mxu0 %v3230_v36  ;;  %1638 = vmatprep.subr.bf16.mxu1 %v3232_v37  ;;  %v3319_v36 = vld [vmem:[#allocation5 + $0x2e8] ss:$16 sps:$4 sm:$0xff]   ;;  %v3324_v37 = vld [vmem:[#allocation5 + $0x304] ss:$16 sps:$4 sm:$0xff]  }
  0x5c   :  { %1475 = vmatpush1.bf16.msra.mxu0 %v3234_v38  ;;  %1639 = vmatpush1.bf16.msra.mxu1 %v3235_v39  ;;  %v3327_v38 = vld [vmem:[#allocation5 + $0x30c] ss:$16 sps:$4 sm:$0xff]   ;;  %v3322_v39 = vld [vmem:[#allocation5 + $0x300] ss:$16 sps:$4 sm:$0xff]  }
  0x5d   :  { %1476 = vmatprep.subr.bf16.mxu0 %v3236_v40  ;;  %1640 = vmatprep.subr.bf16.mxu1 %v3238_v41  ;;  %v3325_v40 = vld [vmem:[#allocation5 + $0x308] ss:$16 sps:$4 sm:$0xff]   ;;  %v3330_v41 = vld [vmem:[#allocation5 + $0x324] ss:$16 sps:$4 sm:$0xff]  }
  0x60   :  { %1477 = vmatpush1.bf16.msra.mxu0 %v3240_v42  ;;  %1641 = vmatpush1.bf16.msra.mxu1 %v3241_v43  ;;  %v3333_v42 = vld [vmem:[#allocation5 + $0x32c] ss:$16 sps:$4 sm:$0xff]   ;;  %v3328_v43 = vld [vmem:[#allocation5 + $0x320] ss:$16 sps:$4 sm:$0xff]  }
  0x61   :  { %1478 = vmatprep.subr.bf16.mxu0 %v3242_v44  ;;  %1642 = vmatprep.subr.bf16.mxu1 %v3244_v45  ;;  %v3331_v44 = vld [vmem:[#allocation5 + $0x328] ss:$16 sps:$4 sm:$0xff]   ;;  %v3336_v45 = vld [vmem:[#allocation5 + $0x344] ss:$16 sps:$4 sm:$0xff]  }
  0x64   :  { %1479 = vmatpush1.bf16.msra.mxu0 %v3246_v47  ;;  %1643 = vmatpush1.bf16.msra.mxu1 %v3247_v49  ;;  %v3334_v47 = vld [vmem:[#allocation5 + $0x340] ss:$16 sps:$4 sm:$0xff]   ;;  %v3342_v49 = vld [vmem:[#allocation5 + $0x364] ss:$16 sps:$4 sm:$0xff]  }
  0x65   :  { %1480 = vmatprep.subr.bf16.mxu0 %v3248_v50  ;;  %1644 = vmatprep.subr.bf16.mxu1 %v3250_v51  ;;  %v3345_v50 = vld [vmem:[#allocation5 + $0x36c] ss:$16 sps:$4 sm:$0xff]   ;;  %v3340_v51 = vld [vmem:[#allocation5 + $0x360] ss:$16 sps:$4 sm:$0xff]  }
  0x68   :  { %1481 = vmatpush1.bf16.msra.mxu0 %v3252_v52  ;;  %1645 = vmatpush1.bf16.msra.mxu1 %v3253_v53  ;;  %v3343_v52 = vld [vmem:[#allocation5 + $0x368] ss:$16 sps:$4 sm:$0xff]   ;;  %v3348_v53 = vld [vmem:[#allocation5 + $0x384] ss:$16 sps:$4 sm:$0xff]  }
  0x69   :  { %1482 = vmatprep.subr.bf16.mxu0 %v3254_v54  ;;  %1646 = vmatprep.subr.bf16.mxu1 %v3256_v55  ;;  %v3351_v54 = vld [vmem:[#allocation5 + $0x38c] ss:$16 sps:$4 sm:$0xff]   ;;  %v3346_v55 = vld [vmem:[#allocation5 + $0x380] ss:$16 sps:$4 sm:$0xff]  }
  0x6c   :  { %1483 = vmatpush1.bf16.msra.mxu0 %v3258_v56  ;;  %1647 = vmatpush1.bf16.msra.mxu1 %v3259_v57  ;;  %v3349_v56 = vld [vmem:[#allocation5 + $0x388] ss:$16 sps:$4 sm:$0xff]   ;;  %v3354_v57 = vld [vmem:[#allocation5 + $0x3a4] ss:$16 sps:$4 sm:$0xff]  }
  0x6d   :  { %1484 = vmatprep.subr.bf16.mxu0 %v3260_v58  ;;  %1648 = vmatprep.subr.bf16.mxu1 %v3262_v59  ;;  %v3357_v58 = vld [vmem:[#allocation5 + $0x3ac] ss:$16 sps:$4 sm:$0xff]   ;;  %v3352_v59 = vld [vmem:[#allocation5 + $0x3a0] ss:$16 sps:$4 sm:$0xff]  }
  0x70   :  { %1485 = vmatpush1.bf16.msra.mxu0 %v3264_v60  ;;  %1649 = vmatpush1.bf16.msra.mxu1 %v3265_v61  ;;  %v3355_v60 = vld [vmem:[#allocation5 + $0x3a8] ss:$16 sps:$4 sm:$0xff]   ;;  %v3360_v61 = vld [vmem:[#allocation5 + $0x3c4] ss:$16 sps:$4 sm:$0xff]  }
  0x71   :  { %1486 = vmatprep.subr.bf16.mxu0 %v3266_v62  ;;  %1650 = vmatprep.subr.bf16.mxu1 %v3268_v63  ;;  %v3363_v62 = vld [vmem:[#allocation5 + $0x3cc] ss:$16 sps:$4 sm:$0xff]   ;;  %v3358_v63 = vld [vmem:[#allocation5 + $0x3c0] ss:$16 sps:$4 sm:$0xff]  }
  0x74   :  { %1487 = vmatpush1.bf16.msra.mxu0 %v3270_v0  ;;  %1651 = vmatpush1.bf16.msra.mxu1 %v3271_v1  ;;  %v3361_v0 = vld [vmem:[#allocation5 + $0x3c8] ss:$16 sps:$4 sm:$0xff]   ;;  %v3366_v1 = vld [vmem:[#allocation5 + $0x3e4] ss:$16 sps:$4 sm:$0xff]  }
  0x75   :  { %1497 = vmatprep.subr.bf16.mxu0 %v3276_v2  ;;  %1661 = vmatprep.subr.bf16.mxu1 %v3279_v3  ;;  %v3369_v2 = vld [vmem:[#allocation5 + $0x3ec] ss:$16 sps:$4 sm:$0xff]   ;;  %v3364_v3 = vld [vmem:[#allocation5 + $0x3e0] ss:$16 sps:$4 sm:$0xff]  }
  0x77   :  { %1489 = vmatmul.mubr.bf16.vlgmr.msra.gmra.mrb[0].mxu0 %v2770_v4  ;;  %1653 = vmatmul.mubr.bf16.vlgmr.msra.gmra.mrb[0].mxu1 %v2770_v4  ;;  %v3367_v4 = vld [vmem:[#allocation5 + $0x3e8] ss:$16 sps:$4 sm:$0xff]  }
  0x78   :  { %1498 = vmatpush1.bf16.msra.mxu0 %v3274_v5  ;;  %1662 = vmatpush1.bf16.msra.mxu1 %v3277_v6  ;;  %v3374_v5 = vld [vmem:[#allocation5 + $0x404] ss:$16 sps:$4 sm:$0xff]   ;;  %v3377_v6 = vld [vmem:[#allocation5 + $0x40c] ss:$16 sps:$4 sm:$0xff]  }
  0x79   :  { %1499 = vmatprep.subr.bf16.mxu0 %v3282_v7  ;;  %1663 = vmatprep.subr.bf16.mxu1 %v3285_v8  ;;  %v2772_v7 = vcombine.low %v3884_v29, %v3884_v29  ;;  %v3372_v8 = vld [vmem:[#allocation5 + $0x400] ss:$16 sps:$4 sm:$0xff]   ;;  %v3407_v29 = vld [vmem:[#allocation5 + $0x4ac] ss:$16 sps:$4 sm:$0xff]  }
  0x7a   :  { %1529 = vmatprep.mubr.bf16.mxu0 %v2773_v30  ;;  %1693 = vmatprep.mubr.bf16.mxu1 %v2773_v30  ;;  %v3402_v30 = vld [vmem:[#allocation5 + $0x4a0] ss:$16 sps:$4 sm:$0xff]  }
  0x7c   :  { %1500 = vmatpush1.bf16.msra.mxu0 %v3280_v9  ;;  %1664 = vmatpush1.bf16.msra.mxu1 %v3283_v10  ;;  %v3375_v9 = vld [vmem:[#allocation5 + $0x408] ss:$16 sps:$4 sm:$0xff]   ;;  %v3380_v10 = vld [vmem:[#allocation5 + $0x424] ss:$16 sps:$4 sm:$0xff]  }
  0x7d   :  { %1501 = vmatprep.subr.bf16.mxu0 %v3288_v11  ;;  %1665 = vmatprep.subr.bf16.mxu1 %v3291_v12  ;;  %v3890_v11 = vld [vmem:[#allocation2 + $0x10] sm:$0xff]  ;;  %v3383_v12 = vld [vmem:[#allocation5 + $0x42c] ss:$16 sps:$4 sm:$0xff]  }
  0x80   :  { %1502 = vmatpush1.bf16.msra.mxu0 %v3286_v13  ;;  %1666 = vmatpush1.bf16.msra.mxu1 %v3289_v14  ;;  %v2775_v13 = vcombine.high %v3890_v11, %v3890_v11  ;;  %v3378_v14 = vld [vmem:[#allocation5 + $0x420] ss:$16 sps:$4 sm:$0xff]  }
  0x81   :  { %1503 = vmatprep.subr.bf16.mxu0 %v3294_v15  ;;  %1667 = vmatprep.subr.bf16.mxu1 %v3297_v16  ;;  %v3381_v15 = vld [vmem:[#allocation5 + $0x428] ss:$16 sps:$4 sm:$0xff]   ;;  %v3386_v16 = vld [vmem:[#allocation5 + $0x444] ss:$16 sps:$4 sm:$0xff]  }
  0x84   :  { %1504 = vmatpush1.bf16.msra.mxu0 %v3292_v17  ;;  %1668 = vmatpush1.bf16.msra.mxu1 %v3295_v18  ;;  %v3389_v17 = vld [vmem:[#allocation5 + $0x44c] ss:$16 sps:$4 sm:$0xff]   ;;  %v3384_v18 = vld [vmem:[#allocation5 + $0x440] ss:$16 sps:$4 sm:$0xff]  }
  0x85   :  { %1505 = vmatprep.subr.bf16.mxu0 %v3300_v19  ;;  %1669 = vmatprep.subr.bf16.mxu1 %v3303_v20  ;;  %v3387_v19 = vld [vmem:[#allocation5 + $0x448] ss:$16 sps:$4 sm:$0xff]   ;;  %v3392_v20 = vld [vmem:[#allocation5 + $0x464] ss:$16 sps:$4 sm:$0xff]  }
  0x88   :  { %1506 = vmatpush1.bf16.msra.mxu0 %v3298_v21  ;;  %1670 = vmatpush1.bf16.msra.mxu1 %v3301_v22  ;;  %v3395_v21 = vld [vmem:[#allocation5 + $0x46c] ss:$16 sps:$4 sm:$0xff]   ;;  %v3390_v22 = vld [vmem:[#allocation5 + $0x460] ss:$16 sps:$4 sm:$0xff]  }
  0x89   :  { %1507 = vmatprep.subr.bf16.mxu0 %v3306_v23  ;;  %1671 = vmatprep.subr.bf16.mxu1 %v3309_v24  ;;  %v3393_v23 = vld [vmem:[#allocation5 + $0x468] ss:$16 sps:$4 sm:$0xff]   ;;  %v3398_v24 = vld [vmem:[#allocation5 + $0x484] ss:$16 sps:$4 sm:$0xff]  }
  0x8c   :  { %1508 = vmatpush1.bf16.msra.mxu0 %v3304_v25  ;;  %1672 = vmatpush1.bf16.msra.mxu1 %v3307_v26  ;;  %v3401_v25 = vld [vmem:[#allocation5 + $0x48c] ss:$16 sps:$4 sm:$0xff]   ;;  %v3396_v26 = vld [vmem:[#allocation5 + $0x480] ss:$16 sps:$4 sm:$0xff]  }
  0x8d   :  { %1509 = vmatprep.subr.bf16.mxu0 %v3312_v27  ;;  %1673 = vmatprep.subr.bf16.mxu1 %v3315_v28  ;;  %v3399_v27 = vld [vmem:[#allocation5 + $0x488] ss:$16 sps:$4 sm:$0xff]   ;;  %v3404_v28 = vld [vmem:[#allocation5 + $0x4a4] ss:$16 sps:$4 sm:$0xff]  }
  0x90   :  { %1510 = vmatpush1.bf16.msra.mxu0 %v3310_v31  ;;  %1674 = vmatpush1.bf16.msra.mxu1 %v3313_v32  ;;  %v3405_v31 = vld [vmem:[#allocation5 + $0x4a8] ss:$16 sps:$4 sm:$0xff]   ;;  %v3410_v32 = vld [vmem:[#allocation5 + $0x4c4] ss:$16 sps:$4 sm:$0xff]  }
  0x91   :  { %1511 = vmatprep.subr.bf16.mxu0 %v3318_v33  ;;  %1675 = vmatprep.subr.bf16.mxu1 %v3321_v34  ;;  %v3413_v33 = vld [vmem:[#allocation5 + $0x4cc] ss:$16 sps:$4 sm:$0xff]   ;;  %v3408_v34 = vld [vmem:[#allocation5 + $0x4c0] ss:$16 sps:$4 sm:$0xff]  }
  0x94   :  { %1512 = vmatpush1.bf16.msra.mxu0 %v3316_v35  ;;  %1676 = vmatpush1.bf16.msra.mxu1 %v3319_v36  ;;  %v3411_v35 = vld [vmem:[#allocation5 + $0x4c8] ss:$16 sps:$4 sm:$0xff]   ;;  %v3416_v36 = vld [vmem:[#allocation5 + $0x4e4] ss:$16 sps:$4 sm:$0xff]  }
  0x95   :  { %1513 = vmatprep.subr.bf16.mxu0 %v3324_v37  ;;  %1677 = vmatprep.subr.bf16.mxu1 %v3327_v38  ;;  %v3419_v37 = vld [vmem:[#allocation5 + $0x4ec] ss:$16 sps:$4 sm:$0xff]   ;;  %v3414_v38 = vld [vmem:[#allocation5 + $0x4e0] ss:$16 sps:$4 sm:$0xff]  }
  0x98   :  { %1514 = vmatpush1.bf16.msra.mxu0 %v3322_v39  ;;  %1678 = vmatpush1.bf16.msra.mxu1 %v3325_v40  ;;  %v3417_v39 = vld [vmem:[#allocation5 + $0x4e8] ss:$16 sps:$4 sm:$0xff]   ;;  %v3422_v40 = vld [vmem:[#allocation5 + $0x504] ss:$16 sps:$4 sm:$0xff]  }
  0x99   :  { %1515 = vmatprep.subr.bf16.mxu0 %v3330_v41  ;;  %1679 = vmatprep.subr.bf16.mxu1 %v3333_v42  ;;  %v3425_v41 = vld [vmem:[#allocation5 + $0x50c] ss:$16 sps:$4 sm:$0xff]   ;;  %v3420_v42 = vld [vmem:[#allocation5 + $0x500] ss:$16 sps:$4 sm:$0xff]  }
  0x9c   :  { %1516 = vmatpush1.bf16.msra.mxu0 %v3328_v43  ;;  %1680 = vmatpush1.bf16.msra.mxu1 %v3331_v44  ;;  %v3423_v43 = vld [vmem:[#allocation5 + $0x508] ss:$16 sps:$4 sm:$0xff]   ;;  %v3428_v44 = vld [vmem:[#allocation5 + $0x524] ss:$16 sps:$4 sm:$0xff]  }
  0x9d   :  { %1517 = vmatprep.subr.bf16.mxu0 %v3336_v45  ;;  %1681 = vmatprep.subr.bf16.mxu1 %v3339_v46  ;;  %v3431_v45 = vld [vmem:[#allocation5 + $0x52c] ss:$16 sps:$4 sm:$0xff]   ;;  %v3426_v46 = vld [vmem:[#allocation5 + $0x520] ss:$16 sps:$4 sm:$0xff]  }
  0xa0   :  { %1518 = vmatpush1.bf16.msra.mxu0 %v3334_v47  ;;  %1682 = vmatpush1.bf16.msra.mxu1 %v3337_v48  ;;  %v3429_v47 = vld [vmem:[#allocation5 + $0x528] ss:$16 sps:$4 sm:$0xff]   ;;  %v3434_v48 = vld [vmem:[#allocation5 + $0x544] ss:$16 sps:$4 sm:$0xff]  }
  0xa1   :  { %1519 = vmatprep.subr.bf16.mxu0 %v3342_v49  ;;  %1683 = vmatprep.subr.bf16.mxu1 %v3345_v50  ;;  %v3437_v49 = vld [vmem:[#allocation5 + $0x54c] ss:$16 sps:$4 sm:$0xff]   ;;  %v3432_v50 = vld [vmem:[#allocation5 + $0x540] ss:$16 sps:$4 sm:$0xff]  }
  0xa4   :  { %1520 = vmatpush1.bf16.msra.mxu0 %v3340_v51  ;;  %1684 = vmatpush1.bf16.msra.mxu1 %v3343_v52  ;;  %v3435_v51 = vld [vmem:[#allocation5 + $0x548] ss:$16 sps:$4 sm:$0xff]   ;;  %v3440_v52 = vld [vmem:[#allocation5 + $0x564] ss:$16 sps:$4 sm:$0xff]  }
  0xa5   :  { %1521 = vmatprep.subr.bf16.mxu0 %v3348_v53  ;;  %1685 = vmatprep.subr.bf16.mxu1 %v3351_v54  ;;  %v3443_v53 = vld [vmem:[#allocation5 + $0x56c] ss:$16 sps:$4 sm:$0xff]   ;;  %v3438_v54 = vld [vmem:[#allocation5 + $0x560] ss:$16 sps:$4 sm:$0xff]  }
  0xa8   :  { %1522 = vmatpush1.bf16.msra.mxu0 %v3346_v55  ;;  %1686 = vmatpush1.bf16.msra.mxu1 %v3349_v56  ;;  %v3441_v55 = vld [vmem:[#allocation5 + $0x568] ss:$16 sps:$4 sm:$0xff]   ;;  %v3446_v56 = vld [vmem:[#allocation5 + $0x584] ss:$16 sps:$4 sm:$0xff]  }
  0xa9   :  { %1523 = vmatprep.subr.bf16.mxu0 %v3354_v57  ;;  %1687 = vmatprep.subr.bf16.mxu1 %v3357_v58  ;;  %v3449_v57 = vld [vmem:[#allocation5 + $0x58c] ss:$16 sps:$4 sm:$0xff]   ;;  %v3444_v58 = vld [vmem:[#allocation5 + $0x580] ss:$16 sps:$4 sm:$0xff]  }
  0xac   :  { %1524 = vmatpush1.bf16.msra.mxu0 %v3352_v59  ;;  %1688 = vmatpush1.bf16.msra.mxu1 %v3355_v60  ;;  %v3447_v59 = vld [vmem:[#allocation5 + $0x588] ss:$16 sps:$4 sm:$0xff]   ;;  %v3452_v60 = vld [vmem:[#allocation5 + $0x5a4] ss:$16 sps:$4 sm:$0xff]  }
  0xad   :  { %1525 = vmatprep.subr.bf16.mxu0 %v3360_v61  ;;  %1689 = vmatprep.subr.bf16.mxu1 %v3363_v62  ;;  %v3455_v61 = vld [vmem:[#allocation5 + $0x5ac] ss:$16 sps:$4 sm:$0xff]   ;;  %v3450_v62 = vld [vmem:[#allocation5 + $0x5a0] ss:$16 sps:$4 sm:$0xff]  }
  0xb0   :  { %1526 = vmatpush1.bf16.msra.mxu0 %v3358_v63  ;;  %1690 = vmatpush1.bf16.msra.mxu1 %v3361_v0  ;;  %v3453_v63 = vld [vmem:[#allocation5 + $0x5a8] ss:$16 sps:$4 sm:$0xff]   ;;  %v3458_v0 = vld [vmem:[#allocation5 + $0x5c4] ss:$16 sps:$4 sm:$0xff]  }
  0xb1   :  { %1527 = vmatprep.subr.bf16.mxu0 %v3366_v1  ;;  %1691 = vmatprep.subr.bf16.mxu1 %v3369_v2  ;;  %v3461_v1 = vld [vmem:[#allocation5 + $0x5cc] ss:$16 sps:$4 sm:$0xff]   ;;  %v3456_v2 = vld [vmem:[#allocation5 + $0x5c0] ss:$16 sps:$4 sm:$0xff]  }
  0xb4   :  { %1528 = vmatpush1.bf16.msra.mxu0 %v3364_v3  ;;  %1692 = vmatpush1.bf16.msra.mxu1 %v3367_v4  ;;  %v3459_v3 = vld [vmem:[#allocation5 + $0x5c8] ss:$16 sps:$4 sm:$0xff]   ;;  %v3464_v4 = vld [vmem:[#allocation5 + $0x5e4] ss:$16 sps:$4 sm:$0xff]  }
  0xb5   :  { %1538 = vmatprep.subr.bf16.mxu0 %v3374_v5  ;;  %1702 = vmatprep.subr.bf16.mxu1 %v3377_v6  ;;  %v3467_v5 = vld [vmem:[#allocation5 + $0x5ec] ss:$16 sps:$4 sm:$0xff]   ;;  %v3462_v6 = vld [vmem:[#allocation5 + $0x5e0] ss:$16 sps:$4 sm:$0xff]  }
  0xb7   :  { %1530 = vmatmul.mubr.bf16.vlgmr.msra.gmra.mrb[0].mxu0 %v2772_v7  ;;  %1694 = vmatmul.mubr.bf16.vlgmr.msra.gmra.mrb[0].mxu1 %v2772_v7  ;;  %v3465_v7 = vld [vmem:[#allocation5 + $0x5e8] ss:$16 sps:$4 sm:$0xff]  }
  0xb8   :  { %1539 = vmatpush1.bf16.msra.mxu0 %v3372_v8  ;;  %1703 = vmatpush1.bf16.msra.mxu1 %v3375_v9  ;;  %v3472_v8 = vld [vmem:[#allocation5 + $0x604] ss:$16 sps:$4 sm:$0xff]   ;;  %v3475_v9 = vld [vmem:[#allocation5 + $0x60c] ss:$16 sps:$4 sm:$0xff]  }
  0xb9   :  { %1540 = vmatprep.subr.bf16.mxu0 %v3380_v10  ;;  %1704 = vmatprep.subr.bf16.mxu1 %v3383_v12  ;;  %v3470_v10 = vld [vmem:[#allocation5 + $0x600] ss:$16 sps:$4 sm:$0xff]   ;;  %v3473_v12 = vld [vmem:[#allocation5 + $0x608] ss:$16 sps:$4 sm:$0xff]  }
  0xba   :  { %1570 = vmatprep.mubr.bf16.mxu0 %v2775_v13  ;;  %1734 = vmatprep.mubr.bf16.mxu1 %v2775_v13  ;;  %v2774_v13 = vcombine.low %v3890_v11, %v3890_v11  ;;  %v3490_v11 = vld [vmem:[#allocation5 + $0x664] ss:$16 sps:$4 sm:$0xff]  }
  0xbc   :  { %1541 = vmatpush1.bf16.msra.mxu0 %v3378_v14  ;;  %1705 = vmatpush1.bf16.msra.mxu1 %v3381_v15  ;;  %v3478_v14 = vld [vmem:[#allocation5 + $0x624] ss:$16 sps:$4 sm:$0xff]   ;;  %v3481_v15 = vld [vmem:[#allocation5 + $0x62c] ss:$16 sps:$4 sm:$0xff]  }
  0xbd   :  { %1542 = vmatprep.subr.bf16.mxu0 %v3386_v16  ;;  %1706 = vmatprep.subr.bf16.mxu1 %v3389_v17  ;;  %v3476_v16 = vld [vmem:[#allocation5 + $0x620] ss:$16 sps:$4 sm:$0xff]   ;;  %v3479_v17 = vld [vmem:[#allocation5 + $0x628] ss:$16 sps:$4 sm:$0xff]  }
  0xc0   :  { %1543 = vmatpush1.bf16.msra.mxu0 %v3384_v18  ;;  %1707 = vmatpush1.bf16.msra.mxu1 %v3387_v19  ;;  %v3484_v18 = vld [vmem:[#allocation5 + $0x644] ss:$16 sps:$4 sm:$0xff]   ;;  %v3487_v19 = vld [vmem:[#allocation5 + $0x64c] ss:$16 sps:$4 sm:$0xff]  }
  0xc1   :  { %1544 = vmatprep.subr.bf16.mxu0 %v3392_v20  ;;  %1708 = vmatprep.subr.bf16.mxu1 %v3395_v21  ;;  %v3482_v20 = vld [vmem:[#allocation5 + $0x640] ss:$16 sps:$4 sm:$0xff]   ;;  %v3485_v21 = vld [vmem:[#allocation5 + $0x648] ss:$16 sps:$4 sm:$0xff]  }
  0xc4   :  { %1545 = vmatpush1.bf16.msra.mxu0 %v3390_v22  ;;  %1709 = vmatpush1.bf16.msra.mxu1 %v3393_v23  ;;  %v3810_v22 = vmov 0   ;;  %v3493_v23 = vld [vmem:[#allocation5 + $0x66c] ss:$16 sps:$4 sm:$0xff]  }
  0xc5   :  { %1546 = vmatprep.subr.bf16.mxu0 %v3398_v24  ;;  %1710 = vmatprep.subr.bf16.mxu1 %v3401_v25  ;;  %v3488_v24 = vld [vmem:[#allocation5 + $0x660] ss:$16 sps:$4 sm:$0xff]   ;;  %v3491_v25 = vld [vmem:[#allocation5 + $0x668] ss:$16 sps:$4 sm:$0xff]  }
  0xc8   :  { %1547 = vmatpush1.bf16.msra.mxu0 %v3396_v26  ;;  %1711 = vmatpush1.bf16.msra.mxu1 %v3399_v27  ;;  %v3496_v26 = vld [vmem:[#allocation5 + $0x684] ss:$16 sps:$4 sm:$0xff]   ;;  %v3499_v27 = vld [vmem:[#allocation5 + $0x68c] ss:$16 sps:$4 sm:$0xff]  }
  0xc9   :  { %1548 = vmatprep.subr.bf16.mxu0 %v3404_v28  ;;  %1712 = vmatprep.subr.bf16.mxu1 %v3407_v29  ;;  %v3494_v28 = vld [vmem:[#allocation5 + $0x680] ss:$16 sps:$4 sm:$0xff]   ;;  %v3497_v29 = vld [vmem:[#allocation5 + $0x688] ss:$16 sps:$4 sm:$0xff]  }
  0xcc   :  { %1549 = vmatpush1.bf16.msra.mxu0 %v3402_v30  ;;  %1713 = vmatpush1.bf16.msra.mxu1 %v3405_v31  ;;  %v3502_v30 = vld [vmem:[#allocation5 + $0x6a4] ss:$16 sps:$4 sm:$0xff]   ;;  %v3505_v31 = vld [vmem:[#allocation5 + $0x6ac] ss:$16 sps:$4 sm:$0xff]  }
  0xcd   :  { %1550 = vmatprep.subr.bf16.mxu0 %v3410_v32  ;;  %1714 = vmatprep.subr.bf16.mxu1 %v3413_v33  ;;  %v3500_v32 = vld [vmem:[#allocation5 + $0x6a0] ss:$16 sps:$4 sm:$0xff]   ;;  %v3503_v33 = vld [vmem:[#allocation5 + $0x6a8] ss:$16 sps:$4 sm:$0xff]  }
  0xd0   :  { %1551 = vmatpush1.bf16.msra.mxu0 %v3408_v34  ;;  %1715 = vmatpush1.bf16.msra.mxu1 %v3411_v35  ;;  %v3508_v34 = vld [vmem:[#allocation5 + $0x6c4] ss:$16 sps:$4 sm:$0xff]   ;;  %v3511_v35 = vld [vmem:[#allocation5 + $0x6cc] ss:$16 sps:$4 sm:$0xff]  }
  0xd1   :  { %1552 = vmatprep.subr.bf16.mxu0 %v3416_v36  ;;  %1716 = vmatprep.subr.bf16.mxu1 %v3419_v37  ;;  %v3506_v36 = vld [vmem:[#allocation5 + $0x6c0] ss:$16 sps:$4 sm:$0xff]   ;;  %v3509_v37 = vld [vmem:[#allocation5 + $0x6c8] ss:$16 sps:$4 sm:$0xff]  }
  0xd4   :  { %1553 = vmatpush1.bf16.msra.mxu0 %v3414_v38  ;;  %1717 = vmatpush1.bf16.msra.mxu1 %v3417_v39  ;;  %v3514_v38 = vld [vmem:[#allocation5 + $0x6e4] ss:$16 sps:$4 sm:$0xff]   ;;  %v3517_v39 = vld [vmem:[#allocation5 + $0x6ec] ss:$16 sps:$4 sm:$0xff]  }
  0xd5   :  { %1554 = vmatprep.subr.bf16.mxu0 %v3422_v40  ;;  %1718 = vmatprep.subr.bf16.mxu1 %v3425_v41  ;;  %v3512_v40 = vld [vmem:[#allocation5 + $0x6e0] ss:$16 sps:$4 sm:$0xff]   ;;  %v3515_v41 = vld [vmem:[#allocation5 + $0x6e8] ss:$16 sps:$4 sm:$0xff]  }
  0xd8   :  { %1555 = vmatpush1.bf16.msra.mxu0 %v3420_v42  ;;  %1719 = vmatpush1.bf16.msra.mxu1 %v3423_v43  ;;  %v3521_v42 = vld [vmem:[#allocation7 + $0x4] ss:$16 sps:$4 sm:$0xff]   ;;  %v3524_v43 = vld [vmem:[#allocation7 + $0xc] ss:$16 sps:$4 sm:$0xff]  }
  0xd9   :  { %1556 = vmatprep.subr.bf16.mxu0 %v3428_v44  ;;  %1720 = vmatprep.subr.bf16.mxu1 %v3431_v45  ;;  %v3518_v44 = vld [vmem:[#allocation2 + $0x18] ss:$0 sps:$4 sm:$0xff]   ;;  %v3519_v45 = vld [vmem:[#allocation7] ss:$16 sps:$4 sm:$0xff]  }
  0xdc   :  { %1557 = vmatpush1.bf16.msra.mxu0 %v3426_v46  ;;  %1721 = vmatpush1.bf16.msra.mxu1 %v3429_v47  ;;  %v3522_v46 = vld [vmem:[#allocation7 + $0x8] ss:$16 sps:$4 sm:$0xff]   ;;  %v3527_v47 = vld [vmem:[#allocation7 + $0x24] ss:$16 sps:$4 sm:$0xff]  }
  0xdd   :  { %1558 = vmatprep.subr.bf16.mxu0 %v3434_v48  ;;  %1722 = vmatprep.subr.bf16.mxu1 %v3437_v49  ;;  %v3530_v48 = vld [vmem:[#allocation7 + $0x2c] ss:$16 sps:$4 sm:$0xff]   ;;  %v3525_v49 = vld [vmem:[#allocation7 + $0x20] ss:$16 sps:$4 sm:$0xff]  }
  0xe0   :  { %1559 = vmatpush1.bf16.msra.mxu0 %v3432_v50  ;;  %1723 = vmatpush1.bf16.msra.mxu1 %v3435_v51  ;;  %v3528_v50 = vld [vmem:[#allocation7 + $0x28] ss:$16 sps:$4 sm:$0xff]   ;;  %v3533_v51 = vld [vmem:[#allocation7 + $0x44] ss:$16 sps:$4 sm:$0xff]  }
  0xe1   :  { %1560 = vmatprep.subr.bf16.mxu0 %v3440_v52  ;;  %1724 = vmatprep.subr.bf16.mxu1 %v3443_v53  ;;  %v3536_v52 = vld [vmem:[#allocation7 + $0x4c] ss:$16 sps:$4 sm:$0xff]   ;;  %v3531_v53 = vld [vmem:[#allocation7 + $0x40] ss:$16 sps:$4 sm:$0xff]  }
  0xe4   :  { %1561 = vmatpush1.bf16.msra.mxu0 %v3438_v54  ;;  %1725 = vmatpush1.bf16.msra.mxu1 %v3441_v55  ;;  %v3534_v54 = vld [vmem:[#allocation7 + $0x48] ss:$16 sps:$4 sm:$0xff]   ;;  %v3539_v55 = vld [vmem:[#allocation7 + $0x64] ss:$16 sps:$4 sm:$0xff]  }
  0xe5   :  { %1562 = vmatprep.subr.bf16.mxu0 %v3446_v56  ;;  %1726 = vmatprep.subr.bf16.mxu1 %v3449_v57  ;;  %v3542_v56 = vld [vmem:[#allocation7 + $0x6c] ss:$16 sps:$4 sm:$0xff]   ;;  %v3537_v57 = vld [vmem:[#allocation7 + $0x60] ss:$16 sps:$4 sm:$0xff]  }
  0xe8   :  { %1563 = vmatpush1.bf16.msra.mxu0 %v3444_v58  ;;  %1727 = vmatpush1.bf16.msra.mxu1 %v3447_v59  ;;  %v3540_v58 = vld [vmem:[#allocation7 + $0x68] ss:$16 sps:$4 sm:$0xff]   ;;  %v3545_v59 = vld [vmem:[#allocation7 + $0x84] ss:$16 sps:$4 sm:$0xff]  }
  0xe9   :  { %1564 = vmatprep.subr.bf16.mxu0 %v3452_v60  ;;  %1728 = vmatprep.subr.bf16.mxu1 %v3455_v61  ;;  %v3548_v60 = vld [vmem:[#allocation7 + $0x8c] ss:$16 sps:$4 sm:$0xff]   ;;  %v3543_v61 = vld [vmem:[#allocation7 + $0x80] ss:$16 sps:$4 sm:$0xff]  }
  0xec   :  { %1565 = vmatpush1.bf16.msra.mxu0 %v3450_v62  ;;  %1729 = vmatpush1.bf16.msra.mxu1 %v3453_v63  ;;  %v3546_v62 = vld [vmem:[#allocation7 + $0x88] ss:$16 sps:$4 sm:$0xff]   ;;  %v3551_v63 = vld [vmem:[#allocation7 + $0xa4] ss:$16 sps:$4 sm:$0xff]  }
  0xed   :  { %1566 = vmatprep.subr.bf16.mxu0 %v3458_v0  ;;  %1730 = vmatprep.subr.bf16.mxu1 %v3461_v1  ;;  %v3554_v0 = vld [vmem:[#allocation7 + $0xac] ss:$16 sps:$4 sm:$0xff]   ;;  %v3549_v1 = vld [vmem:[#allocation7 + $0xa0] ss:$16 sps:$4 sm:$0xff]  }
  0xf0   :  { %1567 = vmatpush1.bf16.msra.mxu0 %v3456_v2  ;;  %1731 = vmatpush1.bf16.msra.mxu1 %v3459_v3  ;;  %v3552_v2 = vld [vmem:[#allocation7 + $0xa8] ss:$16 sps:$4 sm:$0xff]   ;;  %v3557_v3 = vld [vmem:[#allocation7 + $0xc4] ss:$16 sps:$4 sm:$0xff]  }
  0xf1   :  { %1568 = vmatprep.subr.bf16.mxu0 %v3464_v4  ;;  %1732 = vmatprep.subr.bf16.mxu1 %v3467_v5  ;;  %v3560_v4 = vld [vmem:[#allocation7 + $0xcc] ss:$16 sps:$4 sm:$0xff]   ;;  %v3555_v5 = vld [vmem:[#allocation7 + $0xc0] ss:$16 sps:$4 sm:$0xff]  }
  0xf4   :  { %1569 = vmatpush1.bf16.msra.mxu0 %v3462_v6  ;;  %1733 = vmatpush1.bf16.msra.mxu1 %v3465_v7  ;;  %v3558_v6 = vld [vmem:[#allocation7 + $0xc8] ss:$16 sps:$4 sm:$0xff]   ;;  %v3563_v7 = vld [vmem:[#allocation7 + $0xe4] ss:$16 sps:$4 sm:$0xff]  }
  0xf5   :  { %1579 = vmatprep.subr.bf16.mxu0 %v3472_v8  ;;  %1743 = vmatprep.subr.bf16.mxu1 %v3475_v9  ;;  %v3566_v8 = vld [vmem:[#allocation7 + $0xec] ss:$16 sps:$4 sm:$0xff]   ;;  %v3561_v9 = vld [vmem:[#allocation7 + $0xe0] ss:$16 sps:$4 sm:$0xff]  }
  0xf7   :  { %1571 = vmatmul.mubr.bf16.vlgmr.msra.gmra.mrb[0].mxu0 %v2774_v13  ;;  %1735 = vmatmul.mubr.bf16.vlgmr.msra.gmra.mrb[0].mxu1 %v2774_v13  ;;  %v3572_v13 = vld [vmem:[#allocation7 + $0x10c] ss:$16 sps:$4 sm:$0xff]  }
  0xf8   :  { %1580 = vmatpush1.bf16.msra.mxu0 %v3470_v10  ;;  %1744 = vmatpush1.bf16.msra.mxu1 %v3473_v12  ;;  %v3564_v10 = vld [vmem:[#allocation7 + $0xe8] ss:$16 sps:$4 sm:$0xff]   ;;  %v3569_v12 = vld [vmem:[#allocation7 + $0x104] ss:$16 sps:$4 sm:$0xff]  }
  0xf9   :  { %1581 = vmatprep.subr.bf16.mxu0 %v3478_v14  ;;  %1745 = vmatprep.subr.bf16.mxu1 %v3481_v15  ;;  %v3567_v14 = vld [vmem:[#allocation7 + $0x100] ss:$16 sps:$4 sm:$0xff]   ;;  %v3570_v15 = vld [vmem:[#allocation7 + $0x108] ss:$16 sps:$4 sm:$0xff]  }
  0xfa   :  { %1611 = vmatprep.mubr.bf16.mxu0 %v3810_v22  ;;  %1775 = vmatprep.mubr.bf16.mxu1 %v3810_v22  ;;  %v3579_v22 = vld [vmem:[#allocation7 + $0x140] ss:$16 sps:$4 sm:$0xff]  }
  0xfc   :  { %1582 = vmatpush1.bf16.msra.mxu0 %v3476_v16  ;;  %1746 = vmatpush1.bf16.msra.mxu1 %v3479_v17  ;;  %v3575_v16 = vld [vmem:[#allocation7 + $0x124] ss:$16 sps:$4 sm:$0xff]   ;;  %v3578_v17 = vld [vmem:[#allocation7 + $0x12c] ss:$16 sps:$4 sm:$0xff]  }
  0xfd   :  { %1583 = vmatprep.subr.bf16.mxu0 %v3484_v18  ;;  %1747 = vmatprep.subr.bf16.mxu1 %v3487_v19  ;;  %v3573_v18 = vld [vmem:[#allocation7 + $0x120] ss:$16 sps:$4 sm:$0xff]   ;;  %v3576_v19 = vld [vmem:[#allocation7 + $0x128] ss:$16 sps:$4 sm:$0xff]  }
 0x100   :  { %1584 = vmatpush1.bf16.msra.mxu0 %v3482_v20  ;;  %1748 = vmatpush1.bf16.msra.mxu1 %v3485_v21  ;;  %v3581_v20 = vld [vmem:[#allocation7 + $0x144] ss:$16 sps:$4 sm:$0xff]   ;;  %v3584_v21 = vld [vmem:[#allocation7 + $0x14c] ss:$16 sps:$4 sm:$0xff]  }
 0x101   :  { %1585 = vmatprep.subr.bf16.mxu0 %v3490_v11  ;;  %1749 = vmatprep.subr.bf16.mxu1 %v3493_v23  ;;  %v3582_v11 = vld [vmem:[#allocation7 + $0x148] ss:$16 sps:$4 sm:$0xff]   ;;  %v3587_v23 = vld [vmem:[#allocation7 + $0x164] ss:$16 sps:$4 sm:$0xff]  }
 0x104   :  { %1586 = vmatpush1.bf16.msra.mxu0 %v3488_v24  ;;  %1750 = vmatpush1.bf16.msra.mxu1 %v3491_v25  ;;  %v3590_v24 = vld [vmem:[#allocation7 + $0x16c] ss:$16 sps:$4 sm:$0xff]   ;;  %v3585_v25 = vld [vmem:[#allocation7 + $0x160] ss:$16 sps:$4 sm:$0xff]  }
 0x105   :  { %1587 = vmatprep.subr.bf16.mxu0 %v3496_v26  ;;  %1751 = vmatprep.subr.bf16.mxu1 %v3499_v27  ;;  %v3588_v26 = vld [vmem:[#allocation7 + $0x168] ss:$16 sps:$4 sm:$0xff]   ;;  %v3593_v27 = vld [vmem:[#allocation7 + $0x184] ss:$16 sps:$4 sm:$0xff]  }
 0x108   :  { %1588 = vmatpush1.bf16.msra.mxu0 %v3494_v28  ;;  %1752 = vmatpush1.bf16.msra.mxu1 %v3497_v29  ;;  %v3596_v28 = vld [vmem:[#allocation7 + $0x18c] ss:$16 sps:$4 sm:$0xff]   ;;  %v3591_v29 = vld [vmem:[#allocation7 + $0x180] ss:$16 sps:$4 sm:$0xff]  }
 0x109   :  { %1589 = vmatprep.subr.bf16.mxu0 %v3502_v30  ;;  %1753 = vmatprep.subr.bf16.mxu1 %v3505_v31  ;;  %v3594_v30 = vld [vmem:[#allocation7 + $0x188] ss:$16 sps:$4 sm:$0xff]   ;;  %v3599_v31 = vld [vmem:[#allocation7 + $0x1a4] ss:$16 sps:$4 sm:$0xff]  }
 0x10c   :  { %1590 = vmatpush1.bf16.msra.mxu0 %v3500_v32  ;;  %1754 = vmatpush1.bf16.msra.mxu1 %v3503_v33  ;;  %v3602_v32 = vld [vmem:[#allocation7 + $0x1ac] ss:$16 sps:$4 sm:$0xff]   ;;  %v3597_v33 = vld [vmem:[#allocation7 + $0x1a0] ss:$16 sps:$4 sm:$0xff]  }
 0x10d   :  { %1591 = vmatprep.subr.bf16.mxu0 %v3508_v34  ;;  %1755 = vmatprep.subr.bf16.mxu1 %v3511_v35  ;;  %v3600_v34 = vld [vmem:[#allocation7 + $0x1a8] ss:$16 sps:$4 sm:$0xff]   ;;  %v3605_v35 = vld [vmem:[#allocation7 + $0x1c4] ss:$16 sps:$4 sm:$0xff]  }
 0x110   :  { %1592 = vmatpush1.bf16.msra.mxu0 %v3506_v36  ;;  %1756 = vmatpush1.bf16.msra.mxu1 %v3509_v37  ;;  %v3608_v36 = vld [vmem:[#allocation7 + $0x1cc] ss:$16 sps:$4 sm:$0xff]   ;;  %v3603_v37 = vld [vmem:[#allocation7 + $0x1c0] ss:$16 sps:$4 sm:$0xff]  }
 0x111   :  { %1593 = vmatprep.subr.bf16.mxu0 %v3514_v38  ;;  %1757 = vmatprep.subr.bf16.mxu1 %v3517_v39  ;;  %v3606_v38 = vld [vmem:[#allocation7 + $0x1c8] ss:$16 sps:$4 sm:$0xff]   ;;  %v3611_v39 = vld [vmem:[#allocation7 + $0x1e4] ss:$16 sps:$4 sm:$0xff]  }
 0x114   :  { %1594 = vmatpush1.bf16.msra.mxu0 %v3512_v40  ;;  %1758 = vmatpush1.bf16.msra.mxu1 %v3515_v41  ;;  %v3614_v40 = vld [vmem:[#allocation7 + $0x1ec] ss:$16 sps:$4 sm:$0xff]   ;;  %v3609_v41 = vld [vmem:[#allocation7 + $0x1e0] ss:$16 sps:$4 sm:$0xff]  }
 0x115   :  { %2582 = vmatprep.subr.bf16.mxu0 %v3521_v42  ;;  %2664 = vmatprep.subr.bf16.mxu1 %v3524_v43  ;;  %v3612_v42 = vld [vmem:[#allocation7 + $0x1e8] ss:$16 sps:$4 sm:$0xff]   ;;  %v3617_v43 = vld [vmem:[#allocation7 + $0x204] ss:$16 sps:$4 sm:$0xff]  }
 0x117   :  { %1612 = vmatmul.mubr.bf16.vlgmr.msra.gmra.mrb[0].mxu0 %v3518_v44  ;;  %1776 = vmatmul.mubr.bf16.vlgmr.msra.gmra.mrb[0].mxu1 %v3518_v44  ;;  %v3620_v44 = vld [vmem:[#allocation7 + $0x20c] ss:$16 sps:$4 sm:$0xff]  }
 0x118   :  { %2583 = vmatpush1.bf16.msra.mxu0 %v3519_v45  ;;  %2665 = vmatpush1.bf16.msra.mxu1 %v3522_v46  ;;  %v291_v45 = vlaneseq }
 0x119   :  { %2584 = vmatprep.subr.bf16.mxu0 %v3527_v47  ;;  %2666 = vmatprep.subr.bf16.mxu1 %v3530_v48  ;;  %v3902_v48 = vld [vmem:[%s3943_s2] sm:$0xf] }
 0x11a   :  { %v3896_v46 = vshrl.u32 %v291_v45, 7  ;;  %v3677_v45 = vld [vmem:[#allocation7 + $0x344] ss:$16 sps:$4 sm:$0xff]  }
 0x11c   :  { %2585 = vmatpush1.bf16.msra.mxu0 %v3525_v49  ;;  %2667 = vmatpush1.bf16.msra.mxu1 %v3528_v50  ;;  %v293_v47 = vsub.s32 0, %v3896_v46  ;;  %v297_v49 = vsub.s32 1, %v3896_v46  ;;  %v305_v50 = vsub.s32 3, %v3896_v46 }
 0x11d   :  { %2586 = vmatprep.subr.bf16.mxu0 %v3533_v51  ;;  %2668 = vmatprep.subr.bf16.mxu1 %v3536_v52 }
 0x11e   :  { %v294_v51 = vrot.slane %v3902_v48, %v293_v47  ;;  %v298_v52 = vrot.slane %v3902_v48, %v297_v49 }
 0x120   :  { %2587 = vmatpush1.bf16.msra.mxu0 %v3531_v53  ;;  %2669 = vmatpush1.bf16.msra.mxu1 %v3534_v54  ;;  %v306_v53 = vrot.slane %v3902_v48, %v305_v50 }
 0x121   :  { %2588 = vmatprep.subr.bf16.mxu0 %v3539_v55  ;;  %2670 = vmatprep.subr.bf16.mxu1 %v3542_v56 }
 0x124   :  { %2589 = vmatpush1.bf16.msra.mxu0 %v3537_v57  ;;  %2671 = vmatpush1.bf16.msra.mxu1 %v3540_v58 }
 0x125   :  { %2590 = vmatprep.subr.bf16.mxu0 %v3545_v59  ;;  %2672 = vmatprep.subr.bf16.mxu1 %v3548_v60 }
 0x128   :  { %2591 = vmatpush1.bf16.msra.mxu0 %v3543_v61  ;;  %2673 = vmatpush1.bf16.msra.mxu1 %v3546_v62 }
 0x129   :  { %2592 = vmatprep.subr.bf16.mxu0 %v3551_v63  ;;  %2674 = vmatprep.subr.bf16.mxu1 %v3554_v0 }
 0x12c   :  { %2593 = vmatpush1.bf16.msra.mxu0 %v3549_v1  ;;  %2675 = vmatpush1.bf16.msra.mxu1 %v3552_v2 }
 0x12d   :  { %2594 = vmatprep.subr.bf16.mxu0 %v3557_v3  ;;  %2676 = vmatprep.subr.bf16.mxu1 %v3560_v4 }
 0x130   :  { %2595 = vmatpush1.bf16.msra.mxu0 %v3555_v5  ;;  %2677 = vmatpush1.bf16.msra.mxu1 %v3558_v6  ;;  %v3615_v5 = vld [vmem:[#allocation7 + $0x200] ss:$16 sps:$4 sm:$0xff]   ;;  %v3618_v6 = vld [vmem:[#allocation7 + $0x208] ss:$16 sps:$4 sm:$0xff]  }
 0x131   :  { %2596 = vmatprep.subr.bf16.mxu0 %v3563_v7  ;;  %2678 = vmatprep.subr.bf16.mxu1 %v3566_v8  ;;  %v3623_v8 = vld [vmem:[#allocation7 + $0x224] ss:$16 sps:$4 sm:$0xff]  }
 0x134   :  { %2597 = vmatpush1.bf16.msra.mxu0 %v3561_v9  ;;  %2679 = vmatpush1.bf16.msra.mxu1 %v3564_v10  ;;  %v3626_v9 = vld [vmem:[#allocation7 + $0x22c] ss:$16 sps:$4 sm:$0xff]  }
 0x135   :  { %2598 = vmatprep.subr.bf16.mxu0 %v3569_v12  ;;  %2680 = vmatprep.subr.bf16.mxu1 %v3572_v13  ;;  %v3621_v12 = vld [vmem:[#allocation7 + $0x220] ss:$16 sps:$4 sm:$0xff]   ;;  %v3624_v13 = vld [vmem:[#allocation7 + $0x228] ss:$16 sps:$4 sm:$0xff]  }
 0x138   :  { %2599 = vmatpush1.bf16.msra.mxu0 %v3567_v14  ;;  %2681 = vmatpush1.bf16.msra.mxu1 %v3570_v15  ;;  %v3629_v14 = vld [vmem:[#allocation7 + $0x244] ss:$16 sps:$4 sm:$0xff]   ;;  %v3632_v15 = vld [vmem:[#allocation7 + $0x24c] ss:$16 sps:$4 sm:$0xff]  }
 0x139   :  { %2600 = vmatprep.subr.bf16.mxu0 %v3575_v16  ;;  %2682 = vmatprep.subr.bf16.mxu1 %v3578_v17  ;;  %v3627_v16 = vld [vmem:[#allocation7 + $0x240] ss:$16 sps:$4 sm:$0xff]   ;;  %v3630_v17 = vld [vmem:[#allocation7 + $0x248] ss:$16 sps:$4 sm:$0xff]  }
 0x13c   :  { %2601 = vmatpush1.bf16.msra.mxu0 %v3573_v18  ;;  %2683 = vmatpush1.bf16.msra.mxu1 %v3576_v19  ;;  %v3635_v18 = vld [vmem:[#allocation7 + $0x264] ss:$16 sps:$4 sm:$0xff]   ;;  %v3638_v19 = vld [vmem:[#allocation7 + $0x26c] ss:$16 sps:$4 sm:$0xff]  }
 0x13d   :  { %2602 = vmatprep.subr.bf16.mxu0 %v3581_v20  ;;  %2684 = vmatprep.subr.bf16.mxu1 %v3584_v21  ;;  %v3633_v20 = vld [vmem:[#allocation7 + $0x260] ss:$16 sps:$4 sm:$0xff]   ;;  %v3636_v21 = vld [vmem:[#allocation7 + $0x268] ss:$16 sps:$4 sm:$0xff]  }
 0x140   :  { %2603 = vmatpush1.bf16.msra.mxu0 %v3579_v22  ;;  %2685 = vmatpush1.bf16.msra.mxu1 %v3582_v11  ;;  %v3641_v22 = vld [vmem:[#allocation7 + $0x284] ss:$16 sps:$4 sm:$0xff]   ;;  %v3644_v11 = vld [vmem:[#allocation7 + $0x28c] ss:$16 sps:$4 sm:$0xff]  }
 0x141   :  { %2604 = vmatprep.subr.bf16.mxu0 %v3587_v23  ;;  %2686 = vmatprep.subr.bf16.mxu1 %v3590_v24  ;;  %v3639_v23 = vld [vmem:[#allocation7 + $0x280] ss:$16 sps:$4 sm:$0xff]   ;;  %v3642_v24 = vld [vmem:[#allocation7 + $0x288] ss:$16 sps:$4 sm:$0xff]  }
 0x144   :  { %2605 = vmatpush1.bf16.msra.mxu0 %v3585_v25  ;;  %2687 = vmatpush1.bf16.msra.mxu1 %v3588_v26  ;;  %v3647_v25 = vld [vmem:[#allocation7 + $0x2a4] ss:$16 sps:$4 sm:$0xff]   ;;  %v3650_v26 = vld [vmem:[#allocation7 + $0x2ac] ss:$16 sps:$4 sm:$0xff]  }
 0x145   :  { %2606 = vmatprep.subr.bf16.mxu0 %v3593_v27  ;;  %2688 = vmatprep.subr.bf16.mxu1 %v3596_v28  ;;  %v3645_v27 = vld [vmem:[#allocation7 + $0x2a0] ss:$16 sps:$4 sm:$0xff]   ;;  %v3648_v28 = vld [vmem:[#allocation7 + $0x2a8] ss:$16 sps:$4 sm:$0xff]  }
 0x148   :  { %2607 = vmatpush1.bf16.msra.mxu0 %v3591_v29  ;;  %2689 = vmatpush1.bf16.msra.mxu1 %v3594_v30  ;;  %v3653_v29 = vld [vmem:[#allocation7 + $0x2c4] ss:$16 sps:$4 sm:$0xff]   ;;  %v3656_v30 = vld [vmem:[#allocation7 + $0x2cc] ss:$16 sps:$4 sm:$0xff]  }
 0x149   :  { %2608 = vmatprep.subr.bf16.mxu0 %v3599_v31  ;;  %2690 = vmatprep.subr.bf16.mxu1 %v3602_v32  ;;  %v3651_v31 = vld [vmem:[#allocation7 + $0x2c0] ss:$16 sps:$4 sm:$0xff]   ;;  %v3654_v32 = vld [vmem:[#allocation7 + $0x2c8] ss:$16 sps:$4 sm:$0xff]  }
 0x14c   :  { %2609 = vmatpush1.bf16.msra.mxu0 %v3597_v33  ;;  %2691 = vmatpush1.bf16.msra.mxu1 %v3600_v34  ;;  %v3659_v33 = vld [vmem:[#allocation7 + $0x2e4] ss:$16 sps:$4 sm:$0xff]   ;;  %v3662_v34 = vld [vmem:[#allocation7 + $0x2ec] ss:$16 sps:$4 sm:$0xff]  }
 0x14d   :  { %2610 = vmatprep.subr.bf16.mxu0 %v3605_v35  ;;  %2692 = vmatprep.subr.bf16.mxu1 %v3608_v36  ;;  %v3657_v35 = vld [vmem:[#allocation7 + $0x2e0] ss:$16 sps:$4 sm:$0xff]   ;;  %v3660_v36 = vld [vmem:[#allocation7 + $0x2e8] ss:$16 sps:$4 sm:$0xff]  }
 0x150   :  { %2611 = vmatpush1.bf16.msra.mxu0 %v3603_v37  ;;  %2693 = vmatpush1.bf16.msra.mxu1 %v3606_v38  ;;  %v3665_v37 = vld [vmem:[#allocation7 + $0x304] ss:$16 sps:$4 sm:$0xff]   ;;  %v3668_v38 = vld [vmem:[#allocation7 + $0x30c] ss:$16 sps:$4 sm:$0xff]  }
 0x151   :  { %2612 = vmatprep.subr.bf16.mxu0 %v3611_v39  ;;  %2694 = vmatprep.subr.bf16.mxu1 %v3614_v40  ;;  %v3663_v39 = vld [vmem:[#allocation7 + $0x300] ss:$16 sps:$4 sm:$0xff]   ;;  %v3666_v40 = vld [vmem:[#allocation7 + $0x308] ss:$16 sps:$4 sm:$0xff]  }
 0x154   :  { %2613 = vmatpush1.bf16.msra.mxu0 %v3609_v41  ;;  %2695 = vmatpush1.bf16.msra.mxu1 %v3612_v42  ;;  %v3671_v41 = vld [vmem:[#allocation7 + $0x324] ss:$16 sps:$4 sm:$0xff]   ;;  %v3674_v42 = vld [vmem:[#allocation7 + $0x32c] ss:$16 sps:$4 sm:$0xff]  }
 0x155   :  { %2623 = vmatprep.subr.bf16.mxu0 %v3617_v43  ;;  %2705 = vmatprep.subr.bf16.mxu1 %v3620_v44  ;;  %v3669_v43 = vld [vmem:[#allocation7 + $0x320] ss:$16 sps:$4 sm:$0xff]   ;;  %v3672_v44 = vld [vmem:[#allocation7 + $0x328] ss:$16 sps:$4 sm:$0xff]  }
 0x1ea   :  { %v1613_v54 = vpop.f32.mrb[0].mxu0  ;;  %v3915_v55 = vpop.f32.mrb[0].mxu1 }
 0x1eb   :  { %v3129_v56 = vadd.f32 %v1613_v54, %v294_v51  ;;  %v1615_v57 = vpop.f32.mrb[1].mxu0  ;;  %v1779_v58 = vpop.f32.mrb[1].mxu1  ;;  %v3680_v51 = vld [vmem:[#allocation7 + $0x34c] ss:$16 sps:$4 sm:$0xff]   ;;  %v3683_v54 = vld [vmem:[#allocation7 + $0x364] ss:$16 sps:$4 sm:$0xff]  }
 0x1ec   :  { %v3130_v59 = vadd.f32 %v1615_v57, %v298_v52  ;;  %v3132_v60 = vadd.f32 %v1779_v58, %v306_v53  ;;  %v1617_v61 = vpop.f32.mrb[2].mxu0  ;;  %v1781_v62 = vpop.f32.mrb[2].mxu1  ;;  %v3675_v52 = vld [vmem:[#allocation7 + $0x340] ss:$16 sps:$4 sm:$0xff]   ;;  %v3678_v53 = vld [vmem:[#allocation7 + $0x348] ss:$16 sps:$4 sm:$0xff]  }
 0x1ed   :  { %v1784_v63 = vmax.f32 %v3129_v56, 0.0  ;;  %v1618_v0 = vpop.f32.mrb[3].mxu0  ;;  %v1782_v1 = vpop.f32.mrb[3].mxu1  ;;  %v3686_v56 = vld [vmem:[#allocation7 + $0x36c] ss:$16 sps:$4 sm:$0xff]  }
 0x1ee   :  { %v1785_v2 = vmax.f32 %v3130_v59, 0.0  ;;  %v1787_v3 = vmax.f32 %v3132_v60, 0.0  ;;  %v3681_v57 = vld [vmem:[#allocation7 + $0x360] ss:$16 sps:$4 sm:$0xff]   ;;  %v3684_v58 = vld [vmem:[#allocation7 + $0x368] ss:$16 sps:$4 sm:$0xff]  }
 0x1ef   :  { %v1788_v7 = vpack.c.bf16 %v1784_v63, %v1784_v63  ;;  %v3689_v59 = vld [vmem:[#allocation7 + $0x384] ss:$16 sps:$4 sm:$0xff]   ;;  %v3692_v60 = vld [vmem:[#allocation7 + $0x38c] ss:$16 sps:$4 sm:$0xff]   ;;  %v3687_v61 = vld [vmem:[#allocation7 + $0x380] ss:$16 sps:$4 sm:$0xff]  }
 0x1f0   :  { %v1789_v4 = vpack.c.bf16 %v1785_v2, %v1785_v2  ;;  %v1791_v10 = vpack.c.bf16 %v1787_v3, %v1787_v3  ;;  %v3690_v62 = vld [vmem:[#allocation7 + $0x388] ss:$16 sps:$4 sm:$0xff]   ;;  %v301_v63 = vsub.s32 2, %v3896_v46  ;;  %v3695_v0 = vld [vmem:[#allocation7 + $0x3a4] ss:$16 sps:$4 sm:$0xff]  }
 0x1f1   :  { %v3698_v1 = vld [vmem:[#allocation7 + $0x3ac] ss:$16 sps:$4 sm:$0xff]   ;;  %v3693_v2 = vld [vmem:[#allocation7 + $0x3a0] ss:$16 sps:$4 sm:$0xff]   ;;  %v3696_v3 = vld [vmem:[#allocation7 + $0x3a8] ss:$16 sps:$4 sm:$0xff]  }
 0x1f2   :  { %2614 = vmatprep.mubr.bf16.mxu0 %v1789_v4  ;;  %2696 = vmatprep.mubr.bf16.mxu1 %v1789_v4  ;;  %v302_v4 = vrot.slane %v3902_v48, %v301_v63 }
 0x1f3   :  { %2615 = vmatmul.mubr.bf16.vlgmr.msra.gmra.mrb[4].mxu0 %v1788_v7  ;;  %2697 = vmatmul.mubr.bf16.vlgmr.msra.gmra.mrb[4].mxu1 %v1788_v7  ;;  %v3699_v7 = vld [vmem:[#allocation7 + $0x3c0] ss:$16 sps:$4 sm:$0xff]  }
 0x1f4   :  { %2624 = vmatpush1.bf16.msra.mxu0 %v3615_v5  ;;  %2706 = vmatpush1.bf16.msra.mxu1 %v3618_v6  ;;  %v3701_v5 = vld [vmem:[#allocation7 + $0x3c4] ss:$16 sps:$4 sm:$0xff]   ;;  %v3704_v6 = vld [vmem:[#allocation7 + $0x3cc] ss:$16 sps:$4 sm:$0xff]  }
 0x1f5   :  { %2655 = vmatprep.mubr.bf16.mxu0 %v1791_v10  ;;  %2737 = vmatprep.mubr.bf16.mxu1 %v1791_v10  ;;  %v3707_v10 = vld [vmem:[#allocation7 + $0x3e4] ss:$16 sps:$4 sm:$0xff]  }
 0x1f6   :  { %2625 = vmatprep.subr.bf16.mxu0 %v3623_v8  ;;  %2707 = vmatprep.subr.bf16.mxu1 %v3626_v9  ;;  %v3702_v8 = vld [vmem:[#allocation7 + $0x3c8] ss:$16 sps:$4 sm:$0xff]   ;;  %v3131_v9 = vadd.f32 %v3915_v55, %v302_v4  ;;  %v1920_v55 = vld [vmem:[%s3945_s4] sm:$0xf]  ;;  %s3777_s4 = scalar_lea.vmem %s2761_s7, 512 }
 0x1f7   :  { %p3778_p10 = scmp.ne.s32.totalorder %s2761_s7, %s3777_s4  ;;  %p3783_p12 = scmp.lt.s32.totalorder %s3777_s4, %s3777_s4 }
 0x1f8   :  { %2626 = vmatpush1.bf16.msra.mxu0 %v3621_v12  ;;  %2708 = vmatpush1.bf16.msra.mxu1 %v3624_v13  ;;  %v3710_v12 = vld [vmem:[#allocation7 + $0x3ec] ss:$16 sps:$4 sm:$0xff]   ;;  %v3705_v13 = vld [vmem:[#allocation7 + $0x3e0] ss:$16 sps:$4 sm:$0xff]  }
 0x1f9   :  { %2627 = vmatprep.subr.bf16.mxu0 %v3629_v14  ;;  %2709 = vmatprep.subr.bf16.mxu1 %v3632_v15  ;;  %v3708_v14 = vld [vmem:[#allocation7 + $0x3e8] ss:$16 sps:$4 sm:$0xff]   ;;  %v1786_v15 = vmax.f32 %v3131_v9, 0.0  ;;  %p3784_p13 = por %p3783_p12, %p3782_p11 }
 0x1fb   :  { %v1790_v48 = vpack.c.bf16 %v1786_v15, %v1786_v15  ;;  %p3785_p0 = pnand %p3784_p13, %p3778_p10 }
 0x1fc   :  { %2628 = vmatpush1.bf16.msra.mxu0 %v3627_v16  ;;  %2710 = vmatpush1.bf16.msra.mxu1 %v3630_v17  ;;  %v1925_v16 = vrot.slane %v1920_v55, %v293_v47  ;;  %v1933_v17 = vrot.slane %v1920_v55, %v301_v63 }
 0x1fd   :  { %2629 = vmatprep.subr.bf16.mxu0 %v3635_v18  ;;  %2711 = vmatprep.subr.bf16.mxu1 %v3638_v19  ;;  %v1929_v18 = vrot.slane %v1920_v55, %v297_v49  ;;  %v1937_v19 = vrot.slane %v1920_v55, %v305_v50 }
 0x200   :  { %2630 = vmatpush1.bf16.msra.mxu0 %v3633_v20  ;;  %2712 = vmatpush1.bf16.msra.mxu1 %v3636_v21 }
 0x201   :  { %2631 = vmatprep.subr.bf16.mxu0 %v3641_v22  ;;  %2713 = vmatprep.subr.bf16.mxu1 %v3644_v11 }
 0x204   :  { %2632 = vmatpush1.bf16.msra.mxu0 %v3639_v23  ;;  %2714 = vmatpush1.bf16.msra.mxu1 %v3642_v24 }
 0x205   :  { %2633 = vmatprep.subr.bf16.mxu0 %v3647_v25  ;;  %2715 = vmatprep.subr.bf16.mxu1 %v3650_v26 }
 0x208   :  { %2634 = vmatpush1.bf16.msra.mxu0 %v3645_v27  ;;  %2716 = vmatpush1.bf16.msra.mxu1 %v3648_v28 }
 0x209   :  { %2635 = vmatprep.subr.bf16.mxu0 %v3653_v29  ;;  %2717 = vmatprep.subr.bf16.mxu1 %v3656_v30 }
 0x20c   :  { %2636 = vmatpush1.bf16.msra.mxu0 %v3651_v31  ;;  %2718 = vmatpush1.bf16.msra.mxu1 %v3654_v32 }
 0x20d   :  { %2637 = vmatprep.subr.bf16.mxu0 %v3659_v33  ;;  %2719 = vmatprep.subr.bf16.mxu1 %v3662_v34 }
 0x210   :  { %2638 = vmatpush1.bf16.msra.mxu0 %v3657_v35  ;;  %2720 = vmatpush1.bf16.msra.mxu1 %v3660_v36 }
 0x211   :  { %2639 = vmatprep.subr.bf16.mxu0 %v3665_v37  ;;  %2721 = vmatprep.subr.bf16.mxu1 %v3668_v38 }
 0x214   :  { %2640 = vmatpush1.bf16.msra.mxu0 %v3663_v39  ;;  %2722 = vmatpush1.bf16.msra.mxu1 %v3666_v40 }
 0x215   :  { %2641 = vmatprep.subr.bf16.mxu0 %v3671_v41  ;;  %2723 = vmatprep.subr.bf16.mxu1 %v3674_v42 }
 0x218   :  { %2642 = vmatpush1.bf16.msra.mxu0 %v3669_v43  ;;  %2724 = vmatpush1.bf16.msra.mxu1 %v3672_v44 }
 0x219   :  { %2643 = vmatprep.subr.bf16.mxu0 %v3677_v45  ;;  %2725 = vmatprep.subr.bf16.mxu1 %v3680_v51 }
 0x21c   :  { %2644 = vmatpush1.bf16.msra.mxu0 %v3675_v52  ;;  %2726 = vmatpush1.bf16.msra.mxu1 %v3678_v53 }
 0x21d   :  { %2645 = vmatprep.subr.bf16.mxu0 %v3683_v54  ;;  %2727 = vmatprep.subr.bf16.mxu1 %v3686_v56 }
 0x220   :  { %2646 = vmatpush1.bf16.msra.mxu0 %v3681_v57  ;;  %2728 = vmatpush1.bf16.msra.mxu1 %v3684_v58 }
 0x221   :  { %2647 = vmatprep.subr.bf16.mxu0 %v3689_v59  ;;  %2729 = vmatprep.subr.bf16.mxu1 %v3692_v60 }
 0x224   :  { %2648 = vmatpush1.bf16.msra.mxu0 %v3687_v61  ;;  %2730 = vmatpush1.bf16.msra.mxu1 %v3690_v62 }
 0x225   :  { %2649 = vmatprep.subr.bf16.mxu0 %v3695_v0  ;;  %2731 = vmatprep.subr.bf16.mxu1 %v3698_v1 }
 0x228   :  { %2650 = vmatpush1.bf16.msra.mxu0 %v3693_v2  ;;  %2732 = vmatpush1.bf16.msra.mxu1 %v3696_v3 }
 0x229   :  { %2651 = vmatprep.subr.bf16.mxu0 %v3701_v5  ;;  %2733 = vmatprep.subr.bf16.mxu1 %v3704_v6 }
 0x22c   :  { %2652 = vmatpush1.bf16.msra.mxu0 %v3699_v7  ;;  %2734 = vmatpush1.bf16.msra.mxu1 %v3702_v8 }
 0x22d   :  { %2653 = vmatprep.subr.bf16.mxu0 %v3707_v10  ;;  %2735 = vmatprep.subr.bf16.mxu1 %v3710_v12 }
 0x230   :  { %2654 = vmatpush1.bf16.msra.mxu0 %v3705_v13  ;;  %2736 = vmatpush1.bf16.msra.mxu1 %v3708_v14 }
 0x233   :  { %2656 = vmatmul.mubr.bf16.vlgmr.msra.gmra.mrb[4].mxu0 %v1790_v48  ;;  %2738 = vmatmul.mubr.bf16.vlgmr.msra.gmra.mrb[4].mxu1 %v1790_v48 }
 0x306   :  { %v2657_v20 = vpop.f32.mrb[4].mxu0  ;;  %v2739_v21 = vpop.f32.mrb[4].mxu1 }
 0x307   :  { %v3133_v22 = vadd.f32 %v2657_v20, %v1925_v16  ;;  %v3135_v11 = vadd.f32 %v2739_v21, %v1933_v17  ;;  %v2659_v23 = vpop.f32.mrb[5].mxu0  ;;  %v2741_v24 = vpop.f32.mrb[5].mxu1 }
 0x308   :  { %v3134_v25 = vadd.f32 %v2659_v23, %v1929_v18  ;;  %v3136_v26 = vadd.f32 %v2741_v24, %v1937_v19  ;;  %v2661_v27 = vpop.f32.mrb[6].mxu0  ;;  %v2743_v28 = vpop.f32.mrb[6].mxu1 }
 0x309   :  { %v2746_v47 = vmax.f32 %v3133_v22, 0.0  ;;  %v2748_v29 = vmax.f32 %v3135_v11, 0.0  ;;  %v2662_v30 = vpop.f32.mrb[7].mxu0  ;;  %v2744_v31 = vpop.f32.mrb[7].mxu1 }
 0x30a   :  { %v2747_v49 = vmax.f32 %v3134_v25, 0.0  ;;  %v2749_v32 = vmax.f32 %v3136_v26, 0.0 }
 0x30b   :  { %2750 = vst [vmem:[#allocation8] sm:$0xff] %v2746_v47  ;;  %2752 = vst [vmem:[#allocation8 + $0x10] sm:$0xff] %v2748_v29 }
 0x30c   :  { %2751 = vst [vmem:[#allocation8 + $0x8] sm:$0xff] %v2747_v49  ;;  %2753 = vst [vmem:[#allocation8 + $0x18] sm:$0xff] %v2749_v32 }
 0x30d   :  { %3788 = shalt.err (!%p3785_p0)
}
 0x30e   :  { %s3789_s10 = scalar_lea.hbm %s3946_s5, 512 }
 0x30f   :  { %p3790_p1 = scmp.ne.s32.totalorder %s3946_s5, %s3789_s10  ;;  %p3793_p2 = scmp.lt.u32.totalorder %s3789_s10, %s3946_s5 }
 0x311   :  { %p3795_p3 = pnand %p3793_p2, %p3790_p1 }
 0x313   :  { %3798 = shalt.err (!%p3795_p3)
}
 0x314   :  { %2763 = dma.vmem_to_hbm [thread:$0]  %s2761_s7, 512, %s3946_s5, [#allocation4]  }
 0x315   :  { %3803 = dma.done.wait [#allocation4], 512  }
 0x316   :  { %3804 = vsyncadd [#allocation4], 4294966784 }
 0x317   :  { %2767 = vsyncpa [#allocation3], 1 }
 0x318   :  { %2768 = vsyncpa [#allocation6], 1 }
 0x319   :  { %2769 = vsyncpa [#allocation4], 1 }

</bundles_post_ra>
